<compile_context>
chip_gen: v6e
topology: v6e:2x2x1
jax: 0.10.0
libtpu: 0.0.40
codegen_flags: <defaults>
</compile_context>

<pallas_src>
from functools import partial

import jax
import jax.numpy as jnp
from jax import lax
from jax.experimental import pallas as pl
from jax.experimental.pallas import tpu as pltpu


def lstm_classifier_kernel(x_ref, w_ih_ref, w_hh_ref, b_ref, w_fc_ref, b_fc_ref,
                           out_ref, xp_ref, h_ref, c_ref,
                           *, t_chunk, hidden_pad, unroll):
    """One (batch-tile, time-chunk) grid step of the full forward pass.

    x_ref:    (Tc*Bt, D)    compute dtype; row = t*Bt + j (time-major within the tile)
    w_ih_ref: (D, 4*Hp)     compute dtype; gate-major columns [i|f|o|g], each padded to Hp
    w_hh_ref: (Hp, 4*Hp)    compute dtype; padded rows/cols are zero
    b_ref:    (1, 4*Hp)     f32; = b_ih + b_hh, gate-padded (padded entries are zero)
    w_fc_ref: (1, Hp)       f32; fc weight row, zero-padded beyond H
    b_fc_ref: (1, 1)        f32
    out_ref:  (1, Bt)       f32; sigmoid(fc(h_T)); written on the last time-chunk only
    xp_ref:   (Tc*Bt, 4*Hp) f32 scratch; hoisted input projection (+ folded bias)
    h_ref:    (Bt, Hp)      f32 scratch; hidden state, persists across time-chunks
    c_ref:    (Bt, Hp)      f32 scratch; cell  state, persists across time-chunks
    """
    Hp = hidden_pad
    Bt = out_ref.shape[1]
    tc = pl.program_id(1)

    @pl.when(tc == 0)
    def _():
        h_ref[...] = jnp.zeros_like(h_ref)
        c_ref[...] = jnp.zeros_like(c_ref)

    # Hoisted input projection (+ folded bias): ONE throughput-shaped MXU matmul per
    # time-chunk. Only the (Bt,Hp)@(Hp,4Hp) recurrent matmul stays on the serial path.
    xp_ref[...] = (
        jnp.dot(x_ref[...], w_ih_ref[...], preferred_element_type=jnp.float32)
        + b_ref[...])

    def step(t, carry):
        h, c = carry
        row0 = pl.multiple_of(t * Bt, 8)     # aligned, unmasked sublane loads every step
        gates = xp_ref[pl.ds(row0, Bt), :] + jnp.dot(
            h.astype(w_hh_ref.dtype), w_hh_ref[...],
            preferred_element_type=jnp.float32)                  # (Bt, 4*Hp), f32
        # Gate columns are [i|f|o|g]: one fused sigmoid over the contiguous (Bt, 3*Hp)
        # slab + one tanh over g. All slices land on 128-lane vreg boundaries.
        ifo = jax.nn.sigmoid(gates[:, :3 * Hp])
        g = jnp.tanh(gates[:, 3 * Hp:])
        i = ifo[:, 0 * Hp:1 * Hp]
        f = ifo[:, 1 * Hp:2 * Hp]
        o = ifo[:, 2 * Hp:3 * Hp]
        c_new = f * c + i * g
        h_new = o * jnp.tanh(c_new)
        return h_new, c_new

    h, c = lax.fori_loop(0, t_chunk, step, (h_ref[...], c_ref[...]), unroll=unroll)
    h_ref[...] = h
    c_ref[...] = c

    @pl.when(tc == pl.num_programs(1) - 1)
    def _():
        # Classifier head, once per batch tile: (1,Hp)·(Bt,Hp)^T -> lane-dense (1, Bt),
        # so the output store is a single unmasked row (no last-dim-1 masked vst).
        logits = lax.dot_general(
            w_fc_ref[...], h, dimension_numbers=(((1,), (1,)), ((), ())),
            preferred_element_type=jnp.float32) + b_fc_ref[...]
        out_ref[...] = jax.nn.sigmoid(logits)


def _pick_batch_tile(b_pad):
    """Largest multiple-of-8 tile <= 256 that divides the (already 8-padded) batch.

    Single-TC chips (v5e/v6e) run the grid sequentially, so we never shrink the tile
    just to manufacture nb >= 2; on v7x, batches > 256 naturally give nb >= 2 tiles that
    shard across the two TensorCores via the "parallel" grid axis."""
    if b_pad <= 256:
        return b_pad
    best = 8
    for d in range(8, 257, 8):
        if b_pad % d == 0:
            best = d
    return best


def lstm_classifier_forward(x, params, *, compute_dtype=jnp.bfloat16, time_chunk=None):
    """x: (B, T, D). Returns sigmoid(fc(last_hidden)).squeeze() -> (B,) (scalar if B==1)."""
    x = jnp.asarray(x, jnp.float32)
    B, T, D = x.shape
    w_ih = jnp.asarray(params["w_ih"], jnp.float32)   # (4H, D)  torch weight_ih_l0 [i|f|g|o]
    w_hh = jnp.asarray(params["w_hh"], jnp.float32)   # (4H, H)  torch weight_hh_l0
    b_ih = jnp.asarray(params["b_ih"], jnp.float32)   # (4H,)
    b_hh = jnp.asarray(params["b_hh"], jnp.float32)   # (4H,)
    w_fc = jnp.asarray(params["w_fc"], jnp.float32)   # (1, H)   torch fc.weight
    b_fc = jnp.asarray(params["b_fc"], jnp.float32)   # (1,)     torch fc.bias
    H = w_hh.shape[1]
    assert w_ih.shape == (4 * H, D)

    # ---- Wrapper-side layout plumbing (plain JAX glue, outside the kernel) ----
    Hp = ((H + 127) // 128) * 128
    perm = (0, 1, 3, 2)   # torch [i|f|g|o] -> kernel [i|f|o|g]

    def pack_gate_cols(w_t, rows):
        # w_t: (rows_src, 4, H); pad rows to `rows` and each gate's H columns to Hp with
        # exact zeros (see padding invariant at top of file), then flatten gate-major.
        out = jnp.zeros((rows, 4, Hp), jnp.float32)
        out = out.at[:w_t.shape[0], :, :H].set(w_t[:, perm, :])
        return out.reshape(rows, 4 * Hp)

    w_ih_p = pack_gate_cols(w_ih.T.reshape(D, 4, H), D).astype(compute_dtype)
    w_hh_p = pack_gate_cols(w_hh.T.reshape(H, 4, H), Hp).astype(compute_dtype)
    b_p = pack_gate_cols((b_ih + b_hh).reshape(1, 4, H), 1)          # stays f32
    w_fc_p = jnp.zeros((1, Hp), jnp.float32).at[:, :H].set(w_fc)
    b_fc_p = b_fc.reshape(1, 1)

    # Zero-pad batch to a multiple of 8 (aligned sublane tiles; padded rows are discarded
    # in the wrapper), then tile; each tile is laid out time-major-flattened so the kernel
    # never reshapes: row (t*Bt + j) = x[b*Bt + j, t, :].
    B_pad = ((B + 7) // 8) * 8
    if B_pad != B:
        x = jnp.concatenate([x, jnp.zeros((B_pad - B, T, D), jnp.float32)], axis=0)
    B_tile = _pick_batch_tile(B_pad)
    nb = B_pad // B_tile
    x_tiles = (x.reshape(nb, B_tile, T, D)
               .transpose(0, 2, 1, 3)
               .reshape(nb, T * B_tile, D)
               .astype(compute_dtype))

    # ---- Time-chunking + explicit VMEM budgeting ----
    itemsize = jnp.dtype(compute_dtype).itemsize
    fixed_bytes = (2 * (D * 4 * Hp + Hp * 4 * Hp) * itemsize   # weights (double-buffer reservation)
                   + 2 * (4 * Hp + Hp + 1) * 4                 # folded bias / fc row / fc bias (f32)
                   + 2 * B_tile * Hp * 4                       # persistent h, c scratch
                   + 2 * B_tile * 4)                           # output block
    chunk_bytes = lambda tc: tc * B_tile * (4 * Hp * 4          # f32 xp scratch
                                            + 2 * D * itemsize)  # double-buffered x block
    if time_chunk is not None:
        assert T % time_chunk == 0, "time_chunk must divide T"
        T_chunk = int(time_chunk)
    else:
        budget = max((40 << 20) - fixed_bytes, 1 << 20)         # safe even on v7x (64 MiB/TC)
        T_chunk = 1
        for cand in range(1, T + 1):
            if T % cand == 0 and chunk_bytes(cand) <= budget:
                T_chunk = cand
    n_chunks = T // T_chunk
    vmem_limit = int(min(max(fixed_bytes + chunk_bytes(T_chunk) + (8 << 20), 32 << 20),
                         100 << 20))

    # Bounded unroll: full unroll only for short chunks or small live h/c state,
    # otherwise 4..8 so the f32 state doesn't blow past the 64-vreg register file.
    state_elems = B_tile * Hp
    if T_chunk <= 8 or (state_elems <= 8 * 1024 and T_chunk <= 32):
        unroll = True
    elif state_elems >= 32 * 1024:
        unroll = 4
    else:
        unroll = 8

    kernel = partial(lstm_classifier_kernel, t_chunk=T_chunk, hidden_pad=Hp, unroll=unroll)
    pinned = lambda b, tc: (0, 0)    # constant index_map -> weights DMA'd once, stay in VMEM

    grid_spec = pltpu.PrefetchScalarGridSpec(
        num_scalar_prefetch=0,
        grid=(nb, n_chunks),
        in_specs=[
            pl.BlockSpec((None, T_chunk * B_tile, D), lambda b, tc: (b, tc, 0)),  # x chunk
            pl.BlockSpec((D, 4 * Hp), pinned),        # W_ih (pinned)
            pl.BlockSpec((Hp, 4 * Hp), pinned),       # W_hh (pinned)
            pl.BlockSpec((1, 4 * Hp), pinned),        # folded bias
            pl.BlockSpec((1, Hp), pinned),            # fc weight row
            pl.BlockSpec((1, 1), pinned),             # fc bias
        ],
        out_specs=pl.BlockSpec((1, B_tile), lambda b, tc: (b, 0)),   # lane-dense output row
        scratch_shapes=[
            pltpu.VMEM((T_chunk * B_tile, 4 * Hp), jnp.float32),     # xp (chunk projection)
            pltpu.VMEM((B_tile, Hp), jnp.float32),                   # h (persistent)
            pltpu.VMEM((B_tile, Hp), jnp.float32),                   # c (persistent)
        ],
    )

    out = pl.pallas_call(
        kernel,
        out_shape=jax.ShapeDtypeStruct((nb, B_tile), jnp.float32),
        grid_spec=grid_spec,
        compiler_params=pltpu.CompilerParams(
            dimension_semantics=("parallel", "arbitrary"),
            vmem_limit_bytes=vmem_limit),
    )(x_tiles, w_ih_p, w_hh_p, b_p, w_fc_p, b_fc_p)

    return jnp.squeeze(out.reshape(B_pad)[:B])


def _reference_forward(x, params):
    """Pure-JAX reference replicating torch nn.LSTM + fc + sigmoid + squeeze."""
    w_ih, w_hh, b_ih, b_hh, w_fc, b_fc = (params[k] for k in
                                          ("w_ih", "w_hh", "b_ih", "b_hh", "w_fc", "b_fc"))
    B, T, D = x.shape
    H = w_hh.shape[1]
    h = jnp.zeros((B, H), jnp.float32)
    c = jnp.zeros((B, H), jnp.float32)
    for t in range(T):
        gates = x[:, t, :] @ w_ih.T + b_ih + h @ w_hh.T + b_hh
        i = jax.nn.sigmoid(gates[:, 0 * H:1 * H])
        f = jax.nn.sigmoid(gates[:, 1 * H:2 * H])
        g = jnp.tanh(gates[:, 2 * H:3 * H])
        o = jax.nn.sigmoid(gates[:, 3 * H:4 * H])
        c = f * c + i * g
        h = o * jnp.tanh(c)
    return jnp.squeeze(jax.nn.sigmoid(h @ w_fc.T + b_fc))


def init_params(key, input_dim, hidden_dim):
    """Deterministic init mimicking torch's U(-1/sqrt(H), 1/sqrt(H))."""
    k = 1.0 / jnp.sqrt(jnp.float32(hidden_dim))
    keys = jax.random.split(key, 6)
    u = lambda kk, shape: jax.random.uniform(kk, shape, jnp.float32, -k, k)
    return {
        "w_ih": u(keys[0], (4 * hidden_dim, input_dim)),
        "w_hh": u(keys[1], (4 * hidden_dim, hidden_dim)),
        "b_ih": u(keys[2], (4 * hidden_dim,)),
        "b_hh": u(keys[3], (4 * hidden_dim,)),
        "w_fc": u(keys[4], (1, hidden_dim)),
        "b_fc": u(keys[5], (1,)),
    }


if __name__ == "__main__":
    key = jax.random.PRNGKey(0)

    # Config 1: small shapes (B=2, T=8, D=16, H=32); batch padded 2 -> 8.
    B, T, D, H = 2, 8, 16, 32
    k_x, k_p, key = jax.random.split(key, 3)
    x = jax.random.normal(k_x, (B, T, D), jnp.float32)
    params = init_params(k_p, input_dim=D, hidden_dim=H)
    ref = _reference_forward(x, params)

    out_f32 = jax.block_until_ready(
        lstm_classifier_forward(x, params, compute_dtype=jnp.float32))
    assert out_f32.shape == (B,), f"expected shape ({B},), got {out_f32.shape}"
    assert jnp.allclose(out_f32, ref, atol=1e-4, rtol=1e-4), (out_f32, ref)

    out_bf16 = jax.block_until_ready(lstm_classifier_forward(x, params))   # default bf16
    assert jnp.allclose(out_bf16, ref, atol=4e-2, rtol=4e-2), (out_bf16, ref)

    # Config 2: module default hidden_dim=64; force 4-way time-chunking to exercise the
    # persistent-h/c "arbitrary" grid axis (pl.when init + chunked xp/x streaming).
    B2, T2, D2, H2 = 16, 12, 10, 64
    k_x2, k_p2, key = jax.random.split(key, 3)
    x2 = jax.random.normal(k_x2, (B2, T2, D2), jnp.float32)
    params2 = init_params(k_p2, input_dim=D2, hidden_dim=H2)
    ref2 = _reference_forward(x2, params2)

    out2_f32 = jax.block_until_ready(
        lstm_classifier_forward(x2, params2, compute_dtype=jnp.float32, time_chunk=3))
    assert out2_f32.shape == (B2,), f"expected shape ({B2},), got {out2_f32.shape}"
    assert jnp.allclose(out2_f32, ref2, atol=1e-4, rtol=1e-4), (out2_f32, ref2)

    out2_bf16 = jax.block_until_ready(lstm_classifier_forward(x2, params2))
    assert jnp.allclose(out2_bf16, ref2, atol=4e-2, rtol=4e-2), (out2_bf16, ref2)

    # Config 3: batch 512 -> two 256-row tiles on the "parallel" grid axis (megacore/v7x).
    B3, T3, D3, H3 = 512, 4, 8, 32
    k_x3, k_p3 = jax.random.split(key)
    x3 = jax.random.normal(k_x3, (B3, T3, D3), jnp.float32)
    params3 = init_params(k_p3, input_dim=D3, hidden_dim=H3)
    ref3 = _reference_forward(x3, params3)
    out3 = jax.block_until_ready(lstm_classifier_forward(x3, params3))
    assert out3.shape == (B3,), f"expected shape ({B3},), got {out3.shape}"
    assert jnp.allclose(out3, ref3, atol=4e-2, rtol=4e-2), (out3, ref3)

    print("KERNEL_OK")
</pallas_src>

<mosaic_0001>
module attributes {stable_mosaic.version = 11 : i64} {
  func.func @lstm_classifier_kernel(%arg0: i32, %arg1: i32, %arg2: memref<1x64x16xf32, #tpu.memory_space<vmem>>, %arg3: memref<16x512xf32, #tpu.memory_space<vmem>>, %arg4: memref<128x512xf32, #tpu.memory_space<vmem>>, %arg5: memref<1x512xf32, #tpu.memory_space<vmem>>, %arg6: memref<1x128xf32, #tpu.memory_space<vmem>>, %arg7: memref<1x1xf32, #tpu.memory_space<vmem>>, %arg8: memref<1x8xf32, #tpu.memory_space<vmem>>, %arg9: memref<64x512xf32, #tpu.memory_space<vmem>>, %arg10: memref<8x128xf32, #tpu.memory_space<vmem>>, %arg11: memref<8x128xf32, #tpu.memory_space<vmem>>) attributes {dimension_semantics = [#tpu.dimension_semantics<parallel>, #tpu.dimension_semantics<arbitrary>], iteration_bounds = array<i64: 1, 1>, scalar_prefetch = 0 : i64, scratch_operands = 3 : i64, tpu.core_type = #tpu.core_type<tc>, window_params = [{transform_indices = @transform_0, window_bounds = array<i64: 1, 64, 16>}, {pipeline_mode = #tpu.pipeline_mode<synchronous>, transform_indices = @transform_1, window_bounds = array<i64: 16, 512>}, {pipeline_mode = #tpu.pipeline_mode<synchronous>, transform_indices = @transform_2, window_bounds = array<i64: 128, 512>}, {pipeline_mode = #tpu.pipeline_mode<synchronous>, transform_indices = @transform_3, window_bounds = array<i64: 1, 512>}, {pipeline_mode = #tpu.pipeline_mode<synchronous>, transform_indices = @transform_4, window_bounds = array<i64: 1, 128>}, {pipeline_mode = #tpu.pipeline_mode<synchronous>, transform_indices = @transform_5, window_bounds = array<i64: 1, 1>}, {transform_indices = @transform_6, window_bounds = array<i64: 1, 8>}]} {
    %c0_i32 = arith.constant 0 : i32
    %0 = arith.cmpi eq, %arg1, %c0_i32 : i32
    %1 = arith.extui %0 : i1 to i32
    %c0_i32_0 = arith.constant 0 : i32
    %2 = arith.cmpi ne, %1, %c0_i32_0 : i32
    scf.if %2 {
      %cst_68 = arith.constant 0.000000e+00 : f32
      %202 = vector.broadcast %cst_68 : f32 to vector<8x128xf32>
      %c0_69 = arith.constant 0 : index
      %c0_70 = arith.constant 0 : index
      %203 = vector.load %arg10[%c0_69, %c0_70] : memref<8x128xf32, #tpu.memory_space<vmem>>, vector<8x128xf32>
      tpu.vector_store %arg10[%c0_69, %c0_70], %202 {strides = array<i32>} : memref<8x128xf32, #tpu.memory_space<vmem>>, vector<8x128xf32>,
      %cst_71 = arith.constant 0.000000e+00 : f32
      %204 = vector.broadcast %cst_71 : f32 to vector<8x128xf32>
      %c0_72 = arith.constant 0 : index
      %c0_73 = arith.constant 0 : index
      %205 = vector.load %arg11[%c0_72, %c0_73] : memref<8x128xf32, #tpu.memory_space<vmem>>, vector<8x128xf32>
      tpu.vector_store %arg11[%c0_72, %c0_73], %204 {strides = array<i32>} : memref<8x128xf32, #tpu.memory_space<vmem>>, vector<8x128xf32>,
    } else {
    }
    %c0 = arith.constant 0 : index
    %c0_1 = arith.constant 0 : index
    %c0_2 = arith.constant 0 : index
    %3 = vector.load %arg2[%c0, %c0_1, %c0_2] : memref<1x64x16xf32, #tpu.memory_space<vmem>>, vector<1x64x16xf32>
    %4 = vector.shape_cast %3 : vector<1x64x16xf32> to vector<64x16xf32>
    %c0_3 = arith.constant 0 : index
    %c0_4 = arith.constant 0 : index
    %5 = vector.load %arg3[%c0_3, %c0_4] : memref<16x512xf32, #tpu.memory_space<vmem>>, vector<16x512xf32>
    %cst = arith.constant dense<0.000000e+00> : vector<64x512xf32>
    %6 = tpu.matmul %4, %5, %cst {dimension_numbers = #tpu.dot_dimension_numbers<[1], [0], [0], [1], [0, 0, 1, 1], [], []>} : vector<64x16xf32>, vector<16x512xf32>, vector<64x512xf32> -> vector<64x512xf32>
    %c0_5 = arith.constant 0 : index
    %c0_6 = arith.constant 0 : index
    %7 = vector.load %arg5[%c0_5, %c0_6] : memref<1x512xf32, #tpu.memory_space<vmem>>, vector<1x512xf32>
    %8 = vector.broadcast %7 : vector<1x512xf32> to vector<64x512xf32>
    %9 = arith.addf %6, %8 : vector<64x512xf32>
    %c0_7 = arith.constant 0 : index
    %c0_8 = arith.constant 0 : index
    %10 = vector.load %arg9[%c0_7, %c0_8] : memref<64x512xf32, #tpu.memory_space<vmem>>, vector<64x512xf32>
    tpu.vector_store %arg9[%c0_7, %c0_8], %9 {strides = array<i32>} : memref<64x512xf32, #tpu.memory_space<vmem>>, vector<64x512xf32>,
    %c0_9 = arith.constant 0 : index
    %c0_10 = arith.constant 0 : index
    %11 = vector.load %arg10[%c0_9, %c0_10] : memref<8x128xf32, #tpu.memory_space<vmem>>, vector<8x128xf32>
    %c0_11 = arith.constant 0 : index
    %c0_12 = arith.constant 0 : index
    %12 = vector.load %arg11[%c0_11, %c0_12] : memref<8x128xf32, #tpu.memory_space<vmem>>, vector<8x128xf32>
    %c0_i32_13 = arith.constant 0 : i32
    %c8_i32 = arith.constant 8 : i32
    %13 = arith.muli %c0_i32_13, %c8_i32 : i32
    %14 = tpu.assume_multiple %13, 8 : i32
    %15 = arith.index_cast %14 : i32 to index
    %c0_14 = arith.constant 0 : index
    %16 = vector.load %arg9[%15, %c0_14] : memref<64x512xf32, #tpu.memory_space<vmem>>, vector<8x512xf32>
    %c0_15 = arith.constant 0 : index
    %c0_16 = arith.constant 0 : index
    %17 = vector.load %arg4[%c0_15, %c0_16] : memref<128x512xf32, #tpu.memory_space<vmem>>, vector<128x512xf32>
    %cst_17 = arith.constant dense<0.000000e+00> : vector<8x512xf32>
    %18 = tpu.matmul %11, %17, %cst_17 {dimension_numbers = #tpu.dot_dimension_numbers<[1], [0], [0], [1], [0, 0, 1, 1], [], []>} : vector<8x128xf32>, vector<128x512xf32>, vector<8x512xf32> -> vector<8x512xf32>
    %19 = arith.addf %16, %18 : vector<8x512xf32>
    %20 = vector.extract_strided_slice %19 {offsets = [0, 0], sizes = [8, 384], strides = [1, 1]} : vector<8x512xf32> to vector<8x384xf32>
    %21 = arith.negf %20 : vector<8x384xf32>
    %22 = math.exp %21 : vector<8x384xf32>
    %cst_18 = arith.constant 1.000000e+00 : f32
    %23 = vector.broadcast %cst_18 : f32 to vector<8x384xf32>
    %24 = arith.addf %23, %22 : vector<8x384xf32>
    %25 = arith.divf %23, %24 : vector<8x384xf32>
    %26 = vector.extract_strided_slice %19 {offsets = [0, 384], sizes = [8, 128], strides = [1, 1]} : vector<8x512xf32> to vector<8x128xf32>
    %27 = math.tanh %26 : vector<8x128xf32>
    %28 = vector.extract_strided_slice %25 {offsets = [0, 0], sizes = [8, 128], strides = [1, 1]} : vector<8x384xf32> to vector<8x128xf32>
    %29 = vector.extract_strided_slice %25 {offsets = [0, 128], sizes = [8, 128], strides = [1, 1]} : vector<8x384xf32> to vector<8x128xf32>
    %30 = vector.extract_strided_slice %25 {offsets = [0, 256], sizes = [8, 128], strides = [1, 1]} : vector<8x384xf32> to vector<8x128xf32>
    %31 = arith.mulf %29, %12 : vector<8x128xf32>
    %32 = arith.mulf %28, %27 : vector<8x128xf32>
    %33 = arith.addf %31, %32 : vector<8x128xf32>
    %34 = math.tanh %33 : vector<8x128xf32>
    %35 = arith.mulf %30, %34 : vector<8x128xf32>
    %c1_i32 = arith.constant 1 : i32
    %c8_i32_19 = arith.constant 8 : i32
    %36 = arith.muli %c1_i32, %c8_i32_19 : i32
    %37 = tpu.assume_multiple %36, 8 : i32
    %38 = arith.index_cast %37 : i32 to index
    %c0_20 = arith.constant 0 : index
    %39 = vector.load %arg9[%38, %c0_20] : memref<64x512xf32, #tpu.memory_space<vmem>>, vector<8x512xf32>
    %c0_21 = arith.constant 0 : index
    %c0_22 = arith.constant 0 : index
    %40 = vector.load %arg4[%c0_21, %c0_22] : memref<128x512xf32, #tpu.memory_space<vmem>>, vector<128x512xf32>
    %cst_23 = arith.constant dense<0.000000e+00> : vector<8x512xf32>
    %41 = tpu.matmul %35, %40, %cst_23 {dimension_numbers = #tpu.dot_dimension_numbers<[1], [0], [0], [1], [0, 0, 1, 1], [], []>} : vector<8x128xf32>, vector<128x512xf32>, vector<8x512xf32> -> vector<8x512xf32>
    %42 = arith.addf %39, %41 : vector<8x512xf32>
    %43 = vector.extract_strided_slice %42 {offsets = [0, 0], sizes = [8, 384], strides = [1, 1]} : vector<8x512xf32> to vector<8x384xf32>
    %44 = arith.negf %43 : vector<8x384xf32>
    %45 = math.exp %44 : vector<8x384xf32>
    %cst_24 = arith.constant 1.000000e+00 : f32
    %46 = vector.broadcast %cst_24 : f32 to vector<8x384xf32>
    %47 = arith.addf %46, %45 : vector<8x384xf32>
    %48 = arith.divf %46, %47 : vector<8x384xf32>
    %49 = vector.extract_strided_slice %42 {offsets = [0, 384], sizes = [8, 128], strides = [1, 1]} : vector<8x512xf32> to vector<8x128xf32>
    %50 = math.tanh %49 : vector<8x128xf32>
    %51 = vector.extract_strided_slice %48 {offsets = [0, 0], sizes = [8, 128], strides = [1, 1]} : vector<8x384xf32> to vector<8x128xf32>
    %52 = vector.extract_strided_slice %48 {offsets = [0, 128], sizes = [8, 128], strides = [1, 1]} : vector<8x384xf32> to vector<8x128xf32>
    %53 = vector.extract_strided_slice %48 {offsets = [0, 256], sizes = [8, 128], strides = [1, 1]} : vector<8x384xf32> to vector<8x128xf32>
    %54 = arith.mulf %52, %33 : vector<8x128xf32>
    %55 = arith.mulf %51, %50 : vector<8x128xf32>
    %56 = arith.addf %54, %55 : vector<8x128xf32>
    %57 = math.tanh %56 : vector<8x128xf32>
    %58 = arith.mulf %53, %57 : vector<8x128xf32>
    %c2_i32 = arith.constant 2 : i32
    %c8_i32_25 = arith.constant 8 : i32
    %59 = arith.muli %c2_i32, %c8_i32_25 : i32
    %60 = tpu.assume_multiple %59, 8 : i32
    %61 = arith.index_cast %60 : i32 to index
    %c0_26 = arith.constant 0 : index
    %62 = vector.load %arg9[%61, %c0_26] : memref<64x512xf32, #tpu.memory_space<vmem>>, vector<8x512xf32>
    %c0_27 = arith.constant 0 : index
    %c0_28 = arith.constant 0 : index
    %63 = vector.load %arg4[%c0_27, %c0_28] : memref<128x512xf32, #tpu.memory_space<vmem>>, vector<128x512xf32>
    %cst_29 = arith.constant dense<0.000000e+00> : vector<8x512xf32>
    %64 = tpu.matmul %58, %63, %cst_29 {dimension_numbers = #tpu.dot_dimension_numbers<[1], [0], [0], [1], [0, 0, 1, 1], [], []>} : vector<8x128xf32>, vector<128x512xf32>, vector<8x512xf32> -> vector<8x512xf32>
    %65 = arith.addf %62, %64 : vector<8x512xf32>
    %66 = vector.extract_strided_slice %65 {offsets = [0, 0], sizes = [8, 384], strides = [1, 1]} : vector<8x512xf32> to vector<8x384xf32>
    %67 = arith.negf %66 : vector<8x384xf32>
    %68 = math.exp %67 : vector<8x384xf32>
    %cst_30 = arith.constant 1.000000e+00 : f32
    %69 = vector.broadcast %cst_30 : f32 to vector<8x384xf32>
    %70 = arith.addf %69, %68 : vector<8x384xf32>
    %71 = arith.divf %69, %70 : vector<8x384xf32>
    %72 = vector.extract_strided_slice %65 {offsets = [0, 384], sizes = [8, 128], strides = [1, 1]} : vector<8x512xf32> to vector<8x128xf32>
    %73 = math.tanh %72 : vector<8x128xf32>
    %74 = vector.extract_strided_slice %71 {offsets = [0, 0], sizes = [8, 128], strides = [1, 1]} : vector<8x384xf32> to vector<8x128xf32>
    %75 = vector.extract_strided_slice %71 {offsets = [0, 128], sizes = [8, 128], strides = [1, 1]} : vector<8x384xf32> to vector<8x128xf32>
    %76 = vector.extract_strided_slice %71 {offsets = [0, 256], sizes = [8, 128], strides = [1, 1]} : vector<8x384xf32> to vector<8x128xf32>
    %77 = arith.mulf %75, %56 : vector<8x128xf32>
    %78 = arith.mulf %74, %73 : vector<8x128xf32>
    %79 = arith.addf %77, %78 : vector<8x128xf32>
    %80 = math.tanh %79 : vector<8x128xf32>
    %81 = arith.mulf %76, %80 : vector<8x128xf32>
    %c3_i32 = arith.constant 3 : i32
    %c8_i32_31 = arith.constant 8 : i32
    %82 = arith.muli %c3_i32, %c8_i32_31 : i32
    %83 = tpu.assume_multiple %82, 8 : i32
    %84 = arith.index_cast %83 : i32 to index
    %c0_32 = arith.constant 0 : index
    %85 = vector.load %arg9[%84, %c0_32] : memref<64x512xf32, #tpu.memory_space<vmem>>, vector<8x512xf32>
    %c0_33 = arith.constant 0 : index
    %c0_34 = arith.constant 0 : index
    %86 = vector.load %arg4[%c0_33, %c0_34] : memref<128x512xf32, #tpu.memory_space<vmem>>, vector<128x512xf32>
    %cst_35 = arith.constant dense<0.000000e+00> : vector<8x512xf32>
    %87 = tpu.matmul %81, %86, %cst_35 {dimension_numbers = #tpu.dot_dimension_numbers<[1], [0], [0], [1], [0, 0, 1, 1], [], []>} : vector<8x128xf32>, vector<128x512xf32>, vector<8x512xf32> -> vector<8x512xf32>
    %88 = arith.addf %85, %87 : vector<8x512xf32>
    %89 = vector.extract_strided_slice %88 {offsets = [0, 0], sizes = [8, 384], strides = [1, 1]} : vector<8x512xf32> to vector<8x384xf32>
    %90 = arith.negf %89 : vector<8x384xf32>
    %91 = math.exp %90 : vector<8x384xf32>
    %cst_36 = arith.constant 1.000000e+00 : f32
    %92 = vector.broadcast %cst_36 : f32 to vector<8x384xf32>
    %93 = arith.addf %92, %91 : vector<8x384xf32>
    %94 = arith.divf %92, %93 : vector<8x384xf32>
    %95 = vector.extract_strided_slice %88 {offsets = [0, 384], sizes = [8, 128], strides = [1, 1]} : vector<8x512xf32> to vector<8x128xf32>
    %96 = math.tanh %95 : vector<8x128xf32>
    %97 = vector.extract_strided_slice %94 {offsets = [0, 0], sizes = [8, 128], strides = [1, 1]} : vector<8x384xf32> to vector<8x128xf32>
    %98 = vector.extract_strided_slice %94 {offsets = [0, 128], sizes = [8, 128], strides = [1, 1]} : vector<8x384xf32> to vector<8x128xf32>
    %99 = vector.extract_strided_slice %94 {offsets = [0, 256], sizes = [8, 128], strides = [1, 1]} : vector<8x384xf32> to vector<8x128xf32>
    %100 = arith.mulf %98, %79 : vector<8x128xf32>
    %101 = arith.mulf %97, %96 : vector<8x128xf32>
    %102 = arith.addf %100, %101 : vector<8x128xf32>
    %103 = math.tanh %102 : vector<8x128xf32>
    %104 = arith.mulf %99, %103 : vector<8x128xf32>
    %c4_i32 = arith.constant 4 : i32
    %c8_i32_37 = arith.constant 8 : i32
    %105 = arith.muli %c4_i32, %c8_i32_37 : i32
    %106 = tpu.assume_multiple %105, 8 : i32
    %107 = arith.index_cast %106 : i32 to index
    %c0_38 = arith.constant 0 : index
    %108 = vector.load %arg9[%107, %c0_38] : memref<64x512xf32, #tpu.memory_space<vmem>>, vector<8x512xf32>
    %c0_39 = arith.constant 0 : index
    %c0_40 = arith.constant 0 : index
    %109 = vector.load %arg4[%c0_39, %c0_40] : memref<128x512xf32, #tpu.memory_space<vmem>>, vector<128x512xf32>
    %cst_41 = arith.constant dense<0.000000e+00> : vector<8x512xf32>
    %110 = tpu.matmul %104, %109, %cst_41 {dimension_numbers = #tpu.dot_dimension_numbers<[1], [0], [0], [1], [0, 0, 1, 1], [], []>} : vector<8x128xf32>, vector<128x512xf32>, vector<8x512xf32> -> vector<8x512xf32>
    %111 = arith.addf %108, %110 : vector<8x512xf32>
    %112 = vector.extract_strided_slice %111 {offsets = [0, 0], sizes = [8, 384], strides = [1, 1]} : vector<8x512xf32> to vector<8x384xf32>
    %113 = arith.negf %112 : vector<8x384xf32>
    %114 = math.exp %113 : vector<8x384xf32>
    %cst_42 = arith.constant 1.000000e+00 : f32
    %115 = vector.broadcast %cst_42 : f32 to vector<8x384xf32>
    %116 = arith.addf %115, %114 : vector<8x384xf32>
    %117 = arith.divf %115, %116 : vector<8x384xf32>
    %118 = vector.extract_strided_slice %111 {offsets = [0, 384], sizes = [8, 128], strides = [1, 1]} : vector<8x512xf32> to vector<8x128xf32>
    %119 = math.tanh %118 : vector<8x128xf32>
    %120 = vector.extract_strided_slice %117 {offsets = [0, 0], sizes = [8, 128], strides = [1, 1]} : vector<8x384xf32> to vector<8x128xf32>
    %121 = vector.extract_strided_slice %117 {offsets = [0, 128], sizes = [8, 128], strides = [1, 1]} : vector<8x384xf32> to vector<8x128xf32>
    %122 = vector.extract_strided_slice %117 {offsets = [0, 256], sizes = [8, 128], strides = [1, 1]} : vector<8x384xf32> to vector<8x128xf32>
    %123 = arith.mulf %121, %102 : vector<8x128xf32>
    %124 = arith.mulf %120, %119 : vector<8x128xf32>
    %125 = arith.addf %123, %124 : vector<8x128xf32>
    %126 = math.tanh %125 : vector<8x128xf32>
    %127 = arith.mulf %122, %126 : vector<8x128xf32>
    %c5_i32 = arith.constant 5 : i32
    %c8_i32_43 = arith.constant 8 : i32
    %128 = arith.muli %c5_i32, %c8_i32_43 : i32
    %129 = tpu.assume_multiple %128, 8 : i32
    %130 = arith.index_cast %129 : i32 to index
    %c0_44 = arith.constant 0 : index
    %131 = vector.load %arg9[%130, %c0_44] : memref<64x512xf32, #tpu.memory_space<vmem>>, vector<8x512xf32>
    %c0_45 = arith.constant 0 : index
    %c0_46 = arith.constant 0 : index
    %132 = vector.load %arg4[%c0_45, %c0_46] : memref<128x512xf32, #tpu.memory_space<vmem>>, vector<128x512xf32>
    %cst_47 = arith.constant dense<0.000000e+00> : vector<8x512xf32>
    %133 = tpu.matmul %127, %132, %cst_47 {dimension_numbers = #tpu.dot_dimension_numbers<[1], [0], [0], [1], [0, 0, 1, 1], [], []>} : vector<8x128xf32>, vector<128x512xf32>, vector<8x512xf32> -> vector<8x512xf32>
    %134 = arith.addf %131, %133 : vector<8x512xf32>
    %135 = vector.extract_strided_slice %134 {offsets = [0, 0], sizes = [8, 384], strides = [1, 1]} : vector<8x512xf32> to vector<8x384xf32>
    %136 = arith.negf %135 : vector<8x384xf32>
    %137 = math.exp %136 : vector<8x384xf32>
    %cst_48 = arith.constant 1.000000e+00 : f32
    %138 = vector.broadcast %cst_48 : f32 to vector<8x384xf32>
    %139 = arith.addf %138, %137 : vector<8x384xf32>
    %140 = arith.divf %138, %139 : vector<8x384xf32>
    %141 = vector.extract_strided_slice %134 {offsets = [0, 384], sizes = [8, 128], strides = [1, 1]} : vector<8x512xf32> to vector<8x128xf32>
    %142 = math.tanh %141 : vector<8x128xf32>
    %143 = vector.extract_strided_slice %140 {offsets = [0, 0], sizes = [8, 128], strides = [1, 1]} : vector<8x384xf32> to vector<8x128xf32>
    %144 = vector.extract_strided_slice %140 {offsets = [0, 128], sizes = [8, 128], strides = [1, 1]} : vector<8x384xf32> to vector<8x128xf32>
    %145 = vector.extract_strided_slice %140 {offsets = [0, 256], sizes = [8, 128], strides = [1, 1]} : vector<8x384xf32> to vector<8x128xf32>
    %146 = arith.mulf %144, %125 : vector<8x128xf32>
    %147 = arith.mulf %143, %142 : vector<8x128xf32>
    %148 = arith.addf %146, %147 : vector<8x128xf32>
    %149 = math.tanh %148 : vector<8x128xf32>
    %150 = arith.mulf %145, %149 : vector<8x128xf32>
    %c6_i32 = arith.constant 6 : i32
    %c8_i32_49 = arith.constant 8 : i32
    %151 = arith.muli %c6_i32, %c8_i32_49 : i32
    %152 = tpu.assume_multiple %151, 8 : i32
    %153 = arith.index_cast %152 : i32 to index
    %c0_50 = arith.constant 0 : index
    %154 = vector.load %arg9[%153, %c0_50] : memref<64x512xf32, #tpu.memory_space<vmem>>, vector<8x512xf32>
    %c0_51 = arith.constant 0 : index
    %c0_52 = arith.constant 0 : index
    %155 = vector.load %arg4[%c0_51, %c0_52] : memref<128x512xf32, #tpu.memory_space<vmem>>, vector<128x512xf32>
    %cst_53 = arith.constant dense<0.000000e+00> : vector<8x512xf32>
    %156 = tpu.matmul %150, %155, %cst_53 {dimension_numbers = #tpu.dot_dimension_numbers<[1], [0], [0], [1], [0, 0, 1, 1], [], []>} : vector<8x128xf32>, vector<128x512xf32>, vector<8x512xf32> -> vector<8x512xf32>
    %157 = arith.addf %154, %156 : vector<8x512xf32>
    %158 = vector.extract_strided_slice %157 {offsets = [0, 0], sizes = [8, 384], strides = [1, 1]} : vector<8x512xf32> to vector<8x384xf32>
    %159 = arith.negf %158 : vector<8x384xf32>
    %160 = math.exp %159 : vector<8x384xf32>
    %cst_54 = arith.constant 1.000000e+00 : f32
    %161 = vector.broadcast %cst_54 : f32 to vector<8x384xf32>
    %162 = arith.addf %161, %160 : vector<8x384xf32>
    %163 = arith.divf %161, %162 : vector<8x384xf32>
    %164 = vector.extract_strided_slice %157 {offsets = [0, 384], sizes = [8, 128], strides = [1, 1]} : vector<8x512xf32> to vector<8x128xf32>
    %165 = math.tanh %164 : vector<8x128xf32>
    %166 = vector.extract_strided_slice %163 {offsets = [0, 0], sizes = [8, 128], strides = [1, 1]} : vector<8x384xf32> to vector<8x128xf32>
    %167 = vector.extract_strided_slice %163 {offsets = [0, 128], sizes = [8, 128], strides = [1, 1]} : vector<8x384xf32> to vector<8x128xf32>
    %168 = vector.extract_strided_slice %163 {offsets = [0, 256], sizes = [8, 128], strides = [1, 1]} : vector<8x384xf32> to vector<8x128xf32>
    %169 = arith.mulf %167, %148 : vector<8x128xf32>
    %170 = arith.mulf %166, %165 : vector<8x128xf32>
    %171 = arith.addf %169, %170 : vector<8x128xf32>
    %172 = math.tanh %171 : vector<8x128xf32>
    %173 = arith.mulf %168, %172 : vector<8x128xf32>
    %c7_i32 = arith.constant 7 : i32
    %c8_i32_55 = arith.constant 8 : i32
    %174 = arith.muli %c7_i32, %c8_i32_55 : i32
    %175 = tpu.assume_multiple %174, 8 : i32
    %176 = arith.index_cast %175 : i32 to index
    %c0_56 = arith.constant 0 : index
    %177 = vector.load %arg9[%176, %c0_56] : memref<64x512xf32, #tpu.memory_space<vmem>>, vector<8x512xf32>
    %c0_57 = arith.constant 0 : index
    %c0_58 = arith.constant 0 : index
    %178 = vector.load %arg4[%c0_57, %c0_58] : memref<128x512xf32, #tpu.memory_space<vmem>>, vector<128x512xf32>
    %cst_59 = arith.constant dense<0.000000e+00> : vector<8x512xf32>
    %179 = tpu.matmul %173, %178, %cst_59 {dimension_numbers = #tpu.dot_dimension_numbers<[1], [0], [0], [1], [0, 0, 1, 1], [], []>} : vector<8x128xf32>, vector<128x512xf32>, vector<8x512xf32> -> vector<8x512xf32>
    %180 = arith.addf %177, %179 : vector<8x512xf32>
    %181 = vector.extract_strided_slice %180 {offsets = [0, 0], sizes = [8, 384], strides = [1, 1]} : vector<8x512xf32> to vector<8x384xf32>
    %182 = arith.negf %181 : vector<8x384xf32>
    %183 = math.exp %182 : vector<8x384xf32>
    %cst_60 = arith.constant 1.000000e+00 : f32
    %184 = vector.broadcast %cst_60 : f32 to vector<8x384xf32>
    %185 = arith.addf %184, %183 : vector<8x384xf32>
    %186 = arith.divf %184, %185 : vector<8x384xf32>
    %187 = vector.extract_strided_slice %180 {offsets = [0, 384], sizes = [8, 128], strides = [1, 1]} : vector<8x512xf32> to vector<8x128xf32>
    %188 = math.tanh %187 : vector<8x128xf32>
    %189 = vector.extract_strided_slice %186 {offsets = [0, 0], sizes = [8, 128], strides = [1, 1]} : vector<8x384xf32> to vector<8x128xf32>
    %190 = vector.extract_strided_slice %186 {offsets = [0, 128], sizes = [8, 128], strides = [1, 1]} : vector<8x384xf32> to vector<8x128xf32>
    %191 = vector.extract_strided_slice %186 {offsets = [0, 256], sizes = [8, 128], strides = [1, 1]} : vector<8x384xf32> to vector<8x128xf32>
    %192 = arith.mulf %190, %171 : vector<8x128xf32>
    %193 = arith.mulf %189, %188 : vector<8x128xf32>
    %194 = arith.addf %192, %193 : vector<8x128xf32>
    %195 = math.tanh %194 : vector<8x128xf32>
    %196 = arith.mulf %191, %195 : vector<8x128xf32>
    %c8_i32_61 = arith.constant 8 : i32
    %c0_62 = arith.constant 0 : index
    %c0_63 = arith.constant 0 : index
    %197 = vector.load %arg10[%c0_62, %c0_63] : memref<8x128xf32, #tpu.memory_space<vmem>>, vector<8x128xf32>
    tpu.vector_store %arg10[%c0_62, %c0_63], %196 {strides = array<i32>} : memref<8x128xf32, #tpu.memory_space<vmem>>, vector<8x128xf32>,
    %c0_64 = arith.constant 0 : index
    %c0_65 = arith.constant 0 : index
    %198 = vector.load %arg11[%c0_64, %c0_65] : memref<8x128xf32, #tpu.memory_space<vmem>>, vector<8x128xf32>
    tpu.vector_store %arg11[%c0_64, %c0_65], %194 {strides = array<i32>} : memref<8x128xf32, #tpu.memory_space<vmem>>, vector<8x128xf32>,
    %c0_i32_66 = arith.constant 0 : i32
    %199 = arith.cmpi eq, %arg1, %c0_i32_66 : i32
    %200 = arith.extui %199 : i1 to i32
    %c0_i32_67 = arith.constant 0 : i32
    %201 = arith.cmpi ne, %200, %c0_i32_67 : i32
    scf.if %201 {
      %c0_68 = arith.constant 0 : index
      %c0_69 = arith.constant 0 : index
      %202 = vector.load %arg6[%c0_68, %c0_69] : memref<1x128xf32, #tpu.memory_space<vmem>>, vector<1x128xf32>
      %cst_70 = arith.constant dense<0.000000e+00> : vector<1x8xf32>
      %203 = tpu.matmul %202, %196, %cst_70 {dimension_numbers = #tpu.dot_dimension_numbers<[1], [1], [0], [0], [0, 0, 1, 0], [], []>} : vector<1x128xf32>, vector<8x128xf32>, vector<1x8xf32> -> vector<1x8xf32>
      %c0_71 = arith.constant 0 : index
      %c0_72 = arith.constant 0 : index
      %204 = vector.load %arg7[%c0_71, %c0_72] : memref<1x1xf32, #tpu.memory_space<vmem>>, vector<1x1xf32>
      %205 = vector.broadcast %204 : vector<1x1xf32> to vector<1x8xf32>
      %206 = arith.addf %203, %205 : vector<1x8xf32>
      %207 = arith.negf %206 : vector<1x8xf32>
      %208 = math.exp %207 : vector<1x8xf32>
      %cst_73 = arith.constant 1.000000e+00 : f32
      %209 = vector.broadcast %cst_73 : f32 to vector<1x8xf32>
      %210 = arith.addf %209, %208 : vector<1x8xf32>
      %211 = arith.divf %209, %210 : vector<1x8xf32>
      %c0_74 = arith.constant 0 : index
      %c0_75 = arith.constant 0 : index
      %212 = vector.load %arg8[%c0_74, %c0_75] : memref<1x8xf32, #tpu.memory_space<vmem>>, vector<1x8xf32>
      tpu.vector_store %arg8[%c0_74, %c0_75], %211 {strides = array<i32>} : memref<1x8xf32, #tpu.memory_space<vmem>>, vector<1x8xf32>,
    } else {
    }
    return
  }
  func.func @transform_0(%arg0: i32, %arg1: i32) -> (i32, i32, i32) {
    %c0_i32 = arith.constant 0 : i32
    %c0_i32_0 = arith.constant 0 : i32
    return %arg0, %arg1, %c0_i32 : i32, i32, i32
  }
  func.func @transform_1(%arg0: i32, %arg1: i32) -> (i32, i32) {
    %c0_i32 = arith.constant 0 : i32
    %c0_i32_0 = arith.constant 0 : i32
    %c0_i32_1 = arith.constant 0 : i32
    return %c0_i32, %c0_i32_0 : i32, i32
  }
  func.func @transform_2(%arg0: i32, %arg1: i32) -> (i32, i32) {
    %c0_i32 = arith.constant 0 : i32
    %c0_i32_0 = arith.constant 0 : i32
    %c0_i32_1 = arith.constant 0 : i32
    return %c0_i32, %c0_i32_0 : i32, i32
  }
  func.func @transform_3(%arg0: i32, %arg1: i32) -> (i32, i32) {
    %c0_i32 = arith.constant 0 : i32
    %c0_i32_0 = arith.constant 0 : i32
    %c0_i32_1 = arith.constant 0 : i32
    return %c0_i32, %c0_i32_0 : i32, i32
  }
  func.func @transform_4(%arg0: i32, %arg1: i32) -> (i32, i32) {
    %c0_i32 = arith.constant 0 : i32
    %c0_i32_0 = arith.constant 0 : i32
    %c0_i32_1 = arith.constant 0 : i32
    return %c0_i32, %c0_i32_0 : i32, i32
  }
  func.func @transform_5(%arg0: i32, %arg1: i32) -> (i32, i32) {
    %c0_i32 = arith.constant 0 : i32
    %c0_i32_0 = arith.constant 0 : i32
    %c0_i32_1 = arith.constant 0 : i32
    return %c0_i32, %c0_i32_0 : i32, i32
  }
  func.func @transform_6(%arg0: i32, %arg1: i32) -> (i32, i32) {
    %c0_i32 = arith.constant 0 : i32
    %c0_i32_0 = arith.constant 0 : i32
    return %arg0, %c0_i32 : i32, i32
  }
}

</mosaic_0001>

<bundles_post_ra>
// kernel: tpu_custom_call.1
= control target key start
LH: loop header
LB: loop body
LE: loop exit
PB: predicated region body
PF: predicated region fallthrough
CT: control target
= control target key end

     0   :  { %s3336_s0 = inlined_call_operand.vmem [shape: f32[1,64,16], index: 0, kind: input, shape index: {}]   ;;  %s3337_s1 = inlined_call_operand.vmem [shape: f32[16,512], index: 1, kind: input, shape index: {}]   ;;  %s3338_s2 = inlined_call_operand.hbm [shape: f32[128,512], index: 2, kind: input, shape index: {}]   ;;  %s3339_s3 = inlined_call_operand.vmem [shape: f32[1,512], index: 3, kind: input, shape index: {}]   ;;  %s3340_s4 = inlined_call_operand.vmem [shape: f32[1,128], index: 4, kind: input, shape index: {}]   ;;  %s3341_s5 = inlined_call_operand.<no memory space> [shape: f32[1,1], index: 5, kind: input, shape index: {}]   ;;  %s3342_s6 = inlined_call_operand.hbm [shape: f32[1,8], index: 6, kind: output, shape index: {}]  }
   0x1   :  { %v11_v0 = vstv %s3341_s5 }
   0x2   :  { %12 = vst [vmem:[#allocation5] sm:$0x1] %v11_v0 }
   0x3   :  { %13 = vsyncpa [#allocation7], 0 }
   0x4   :  { %14 = vsyncpa [#allocation8], 0  ;;  %s2261_s23 = smov [#allocation6]  }
   0x5   :  { %s24_s24 = sshll.u32 %s2261_s23, 4  ;;  %s25_s24 = int_to_ptr.vmem [resolvable:$true] %s24_s24 }
   0x6   :  { %s2225_s25 = scalar_lea.vmem %s25_s24, 8192  ;;  %p2230_p1 = scmp.lt.s32.totalorder %s25_s24, %s25_s24 }
   0x7   :  { %p2226_p0 = scmp.ne.s32.totalorder %s25_s24, %s2225_s25  ;;  %p2231_p2 = scmp.lt.s32.totalorder %s2225_s25, %s2225_s25 }
   0x9   :  { %p2232_p3 = por %p2231_p2, %p2230_p1 }
   0xb   :  { %p2233_p4 = pnand %p2232_p3, %p2226_p0 }
   0xd   :  { %2236 = shalt.err (!%p2233_p4)
}
   0xe   :  { %s2262_s26 = smov 512   ;;  %s2263_s27 = smov 32  }
   0xf   :  { %30 = dma.hbm_to_vmem [thread:$0]  %s3338_s2, 8192, %s25_s24, [#allocation7], %s2262_s26, %s2262_s26, %s2263_s27  }
  0x10   :  { %2257 = dma.done.wait [#allocation7], 8192  }
  0x11   :  { %2258 = vsyncadd [#allocation7], 4294959104  ;;  %v3343_v1 = vmov 0.0   ;;  %v59_v2 = vld [vmem:[%s3337_s1 + $0x28] sm:$0xff]  ;;  %v61_v3 = vld [vmem:[%s3337_s1 + $0x38] sm:$0xff]  ;;  %vm84_vm0 = vcmask 130048  }
  0x12   :  { %173 = vmatprep.mubr.f32.mxu0 %v3343_v1  ;;  %286 = vmatprep.mubr.f32.mxu1 %v3343_v1  ;;  %v58_v4 = vld [vmem:[%s3337_s1 + $0x20] sm:$0xff]  ;;  %v60_v5 = vld [vmem:[%s3337_s1 + $0x30] sm:$0xff]  ;;  %v55_v6 = vld [vmem:[%s3337_s1 + $0x8] sm:$0xff]  ;;  %vm2265_vm1 = vmmov 0   ;;  %s2267_s11 = smov [#allocation9]   ;;  %vm1941_vm2 = vcmask 57344  }
  0x13   :  { %137 = vmatprep.subr.mxu0 %v59_v2  ;;  %250 = vmatprep.subr.mxu1 %v61_v3  ;;  %v57_v7 = vld [vmem:[%s3337_s1 + $0x18] sm:$0xff]  ;;  %v54_v8 = vld [vmem:[%s3337_s1] sm:$0xff]  ;;  %v56_v9 = vld [vmem:[%s3337_s1 + $0x10] sm:$0xff]  ;;  %s1949_s12 = sshll.u32 %s2267_s11, 4  ;;  %s1950_s12 = int_to_ptr.vmem [resolvable:$true] %s1949_s12 }
  0x14   :  { %138 = vmatpush1.msra.mxu0 %v58_v4  ;;  %251 = vmatpush1.msra.mxu1 %v60_v5  ;;  %v46_v10 = vld [vmem:[%s3336_s0] sm:$0xff]  ;;  %v2338_v11 = vld [vmem:[#allocation6 + $0x1e8] sm:$0xff]  ;;  %v2344_v14 = vld [vmem:[#allocation6 + $0x1f0] sm:$0xff]  ;;  %s2241_s13 = scalar_lea.vmem %s1950_s12, 32  ;;  %p2242_p6 = scmp.lt.s32.totalorder %s1950_s12, %s1950_s12 }
  0x15   :  { %139 = vmatprep.subr.mxu0 %v55_v6  ;;  %252 = vmatprep.subr.mxu1 %v57_v7  ;;  %3433 = vst [vmem:[#allocation12_spill] sm:$0xff] %v2338_v11  ;;  %v2340_v12 = vld [vmem:[#allocation6 + $0x1f8] sm:$0xff]  ;;  %v2342_v13 = vld [vmem:[#allocation6 + $0x1e0] sm:$0xff]  ;;  %v2348_v15 = vld [vmem:[#allocation6 + $0x1c8] sm:$0xff] }
  0x16   :  { %3434 = vst [vmem:[#allocation13_spill] sm:$0xff] %v2340_v12  ;;  %140 = vmatpush1.msra.mxu0 %v54_v8  ;;  %253 = vmatpush1.msra.mxu1 %v56_v9  ;;  %v2350_v16 = vld [vmem:[#allocation6 + $0x1d8] sm:$0xff]  ;;  %v2356_v17 = vld [vmem:[#allocation6 + $0x1c0] sm:$0xff]  ;;  %v2358_v18 = vld [vmem:[#allocation6 + $0x1d0] sm:$0xff] }
  0x17   :  { %1965 = vmatmul.mubr.msk.f32.vlgmr.msra.gmra.mxu0 %vm84_vm0, %v46_v10  ;;  %1973 = vmatmul.mubr.msk.f32.vlgmr.msra.gmra.mxu1 %vm84_vm0, %v46_v10  ;;  %v47_v19 = vld [vmem:[%s3336_s0 + $0x8] sm:$0xff]  ;;  %v2369_v21 = vld [vmem:[#allocation6 + $0x1b8] sm:$0xff]  ;;  %v2375_v23 = vld [vmem:[#allocation6 + $0x1b0] sm:$0xff] }
  0x18   :  { %440 = vmatprep.subr.mxu0 %v2338_v11  ;;  %511 = vmatprep.subr.mxu1 %v2340_v12  ;;  %v2367_v20 = vld [vmem:[#allocation6 + $0x1a8] sm:$0xff]  ;;  %v2373_v22 = vld [vmem:[#allocation6 + $0x1a0] sm:$0xff]  ;;  %v2381_v25 = vld [vmem:[#allocation6 + $0x198] sm:$0xff] }
  0x19   :  { %441 = vmatpush1.msra.mxu0 %v2342_v13  ;;  %512 = vmatpush1.msra.mxu1 %v2344_v14  ;;  %v2379_v24 = vld [vmem:[#allocation6 + $0x188] sm:$0xff]  ;;  %v2387_v26 = vld [vmem:[#allocation6 + $0x180] sm:$0xff]  ;;  %v2389_v27 = vld [vmem:[#allocation6 + $0x190] sm:$0xff] }
  0x1a   :  { %442 = vmatprep.subr.mxu0 %v2348_v15  ;;  %513 = vmatprep.subr.mxu1 %v2350_v16  ;;  %v48_v28 = vld [vmem:[%s3336_s0 + $0x10] sm:$0xff]  ;;  %v2400_v30 = vld [vmem:[#allocation6 + $0x178] sm:$0xff]  ;;  %v2404_v31 = vld [vmem:[#allocation6 + $0x160] sm:$0xff] }
  0x1b   :  { %179 = vmatprep.mubr.f32.mxu0 %v3343_v1  ;;  %292 = vmatprep.mubr.f32.mxu1 %v3343_v1  ;;  %v2398_v29 = vld [vmem:[#allocation6 + $0x168] sm:$0xff]  ;;  %v2406_v32 = vld [vmem:[#allocation6 + $0x170] sm:$0xff]  ;;  %v2412_v34 = vld [vmem:[#allocation6 + $0x158] sm:$0xff] }
  0x1c   :  { %443 = vmatpush1.msra.mxu0 %v2356_v17  ;;  %514 = vmatpush1.msra.mxu1 %v2358_v18  ;;  %v2410_v33 = vld [vmem:[#allocation6 + $0x148] sm:$0xff]  ;;  %v2418_v35 = vld [vmem:[#allocation6 + $0x140] sm:$0xff]  ;;  %v2420_v36 = vld [vmem:[#allocation6 + $0x150] sm:$0xff] }
  0x1d   :  { %1966 = vmatmul.mubr.msk.f32.gmra.mxu0 %vm84_vm0, %v47_v19  ;;  %1974 = vmatmul.mubr.msk.f32.gmra.mxu1 %vm84_vm0, %v47_v19  ;;  %v49_v37 = vld [vmem:[%s3336_s0 + $0x18] sm:$0xff]  ;;  %v2429_v38 = vld [vmem:[#allocation6 + $0x128] sm:$0xff]  ;;  %v2435_v40 = vld [vmem:[#allocation6 + $0x120] sm:$0xff] }
  0x1e   :  { %444 = vmatprep.subr.mxu0 %v2367_v20  ;;  %515 = vmatprep.subr.mxu1 %v2369_v21  ;;  %v2431_v39 = vld [vmem:[#allocation6 + $0x138] sm:$0xff]  ;;  %v2437_v41 = vld [vmem:[#allocation6 + $0x130] sm:$0xff]  ;;  %v2441_v42 = vld [vmem:[#allocation6 + $0x108] sm:$0xff] }
  0x1f   :  { %445 = vmatpush1.msra.mxu0 %v2373_v22  ;;  %516 = vmatpush1.msra.mxu1 %v2375_v23  ;;  %v2443_v43 = vld [vmem:[#allocation6 + $0x118] sm:$0xff]  ;;  %v2449_v44 = vld [vmem:[#allocation6 + $0x100] sm:$0xff]  ;;  %v2451_v45 = vld [vmem:[#allocation6 + $0x110] sm:$0xff] }
  0x20   :  { %446 = vmatprep.subr.mxu0 %v2379_v24  ;;  %517 = vmatprep.subr.mxu1 %v2381_v25  ;;  %v50_v46 = vld [vmem:[%s3336_s0 + $0x20] sm:$0xff]  ;;  %v2460_v47 = vld [vmem:[#allocation6 + $0xe8] sm:$0xff]  ;;  %v2468_v50 = vld [vmem:[#allocation6 + $0xf0] sm:$0xff] }
  0x21   :  { %185 = vmatprep.mubr.f32.mxu0 %v3343_v1  ;;  %298 = vmatprep.mubr.f32.mxu1 %v3343_v1  ;;  %v2462_v48 = vld [vmem:[#allocation6 + $0xf8] sm:$0xff]  ;;  %v2466_v49 = vld [vmem:[#allocation6 + $0xe0] sm:$0xff]  ;;  %v2472_v51 = vld [vmem:[#allocation6 + $0xc8] sm:$0xff] }
  0x22   :  { %447 = vmatpush1.msra.mxu0 %v2387_v26  ;;  %518 = vmatpush1.msra.mxu1 %v2389_v27  ;;  %v2474_v52 = vld [vmem:[#allocation6 + $0xd8] sm:$0xff]  ;;  %v2480_v53 = vld [vmem:[#allocation6 + $0xc0] sm:$0xff]  ;;  %v2482_v54 = vld [vmem:[#allocation6 + $0xd0] sm:$0xff] }
  0x23   :  { %1967 = vmatmul.mubr.msk.f32.gmra.mxu0 %vm84_vm0, %v48_v28  ;;  %1975 = vmatmul.mubr.msk.f32.gmra.mxu1 %vm84_vm0, %v48_v28  ;;  %v51_v55 = vld [vmem:[%s3336_s0 + $0x28] sm:$0xff]  ;;  %v2493_v57 = vld [vmem:[#allocation6 + $0xb8] sm:$0xff]  ;;  %v2499_v59 = vld [vmem:[#allocation6 + $0xb0] sm:$0xff] }
  0x24   :  { %448 = vmatprep.subr.mxu0 %v2398_v29  ;;  %519 = vmatprep.subr.mxu1 %v2400_v30  ;;  %v2491_v56 = vld [vmem:[#allocation6 + $0xa8] sm:$0xff]  ;;  %v2497_v58 = vld [vmem:[#allocation6 + $0xa0] sm:$0xff]  ;;  %v2505_v61 = vld [vmem:[#allocation6 + $0x98] sm:$0xff] }
  0x25   :  { %449 = vmatpush1.msra.mxu0 %v2404_v31  ;;  %520 = vmatpush1.msra.mxu1 %v2406_v32  ;;  %v2503_v60 = vld [vmem:[#allocation6 + $0x88] sm:$0xff]  ;;  %3436 = vst [vmem:[#allocation15_spill] sm:$0xff] %v2505_v61  ;;  %v2511_v62 = vld [vmem:[#allocation6 + $0x80] sm:$0xff]  ;;  %v2513_v63 = vld [vmem:[#allocation6 + $0x90] sm:$0xff] }
  0x26   :  { %450 = vmatprep.subr.mxu0 %v2410_v33  ;;  %521 = vmatprep.subr.mxu1 %v2412_v34  ;;  %3435 = vst [vmem:[#allocation14_spill] sm:$0xff] %v2503_v60  ;;  %3437 = vst [vmem:[#allocation16_spill] sm:$0xff] %v2511_v62  ;;  %v52_v0 = vld [vmem:[%s3336_s0 + $0x30] sm:$0xff]  ;;  %v2524_v3 = vld [vmem:[#allocation6 + $0x78] sm:$0xff] }
  0x27   :  { %191 = vmatprep.mubr.f32.mxu0 %v3343_v1  ;;  %304 = vmatprep.mubr.f32.mxu1 %v3343_v1  ;;  %3438 = vst [vmem:[#allocation17_spill] sm:$0xff] %v2513_v63  ;;  %v2522_v2 = vld [vmem:[#allocation6 + $0x68] sm:$0xff]  ;;  %3440 = vst [vmem:[#allocation19_spill] sm:$0xff] %v2524_v3  ;;  %v2528_v4 = vld [vmem:[#allocation6 + $0x60] sm:$0xff] }
  0x28   :  { %451 = vmatpush1.msra.mxu0 %v2418_v35  ;;  %522 = vmatpush1.msra.mxu1 %v2420_v36  ;;  %3439 = vst [vmem:[#allocation18_spill] sm:$0xff] %v2522_v2  ;;  %3441 = vst [vmem:[#allocation20_spill] sm:$0xff] %v2528_v4  ;;  %v2530_v5 = vld [vmem:[#allocation6 + $0x70] sm:$0xff]  ;;  %v2534_v6 = vld [vmem:[#allocation6 + $0x48] sm:$0xff] }
  0x29   :  { %1968 = vmatmul.mubr.msk.f32.gmra.mxu0 %vm84_vm0, %v49_v37  ;;  %1976 = vmatmul.mubr.msk.f32.gmra.mxu1 %vm84_vm0, %v49_v37  ;;  %3442 = vst [vmem:[#allocation21_spill] sm:$0xff] %v2530_v5  ;;  %3443 = vst [vmem:[#allocation22_spill] sm:$0xff] %v2534_v6  ;;  %v2536_v7 = vld [vmem:[#allocation6 + $0x58] sm:$0xff]  ;;  %v2542_v8 = vld [vmem:[#allocation6 + $0x40] sm:$0xff] }
  0x2a   :  { %452 = vmatprep.subr.mxu0 %v2429_v38  ;;  %523 = vmatprep.subr.mxu1 %v2431_v39  ;;  %3444 = vst [vmem:[#allocation23_spill] sm:$0xff] %v2536_v7  ;;  %3445 = vst [vmem:[#allocation24_spill] sm:$0xff] %v2542_v8  ;;  %v2544_v9 = vld [vmem:[#allocation6 + $0x50] sm:$0xff]  ;;  %v2553_v19 = vld [vmem:[#allocation6 + $0x28] sm:$0xff] }
  0x2b   :  { %453 = vmatpush1.msra.mxu0 %v2435_v40  ;;  %524 = vmatpush1.msra.mxu1 %v2437_v41  ;;  %3446 = vst [vmem:[#allocation25_spill] sm:$0xff] %v2544_v9  ;;  %v53_v10 = vld [vmem:[%s3336_s0 + $0x38] sm:$0xff]  ;;  %3447 = vst [vmem:[#allocation26_spill] sm:$0xff] %v2553_v19  ;;  %v2559_v37 = vld [vmem:[#allocation6 + $0x20] sm:$0xff] }
  0x2c   :  { %454 = vmatprep.subr.mxu0 %v2441_v42  ;;  %525 = vmatprep.subr.mxu1 %v2443_v43  ;;  %v2555_v28 = vld [vmem:[#allocation6 + $0x38] sm:$0xff]  ;;  %3449 = vst [vmem:[#allocation28_spill] sm:$0xff] %v2559_v37 }
  0x2d   :  { %197 = vmatprep.mubr.f32.mxu0 %v3343_v1  ;;  %310 = vmatprep.mubr.f32.mxu1 %v3343_v1  ;;  %3448 = vst [vmem:[#allocation27_spill] sm:$0xff] %v2555_v28 }
  0x2e   :  { %455 = vmatpush1.msra.mxu0 %v2449_v44  ;;  %526 = vmatpush1.msra.mxu1 %v2451_v45 }
  0x2f   :  { %1969 = vmatmul.mubr.msk.f32.gmra.mxu0 %vm84_vm0, %v50_v46  ;;  %1977 = vmatmul.mubr.msk.f32.gmra.mxu1 %vm84_vm0, %v50_v46  ;;  %v2561_v46 = vld [vmem:[#allocation6 + $0x30] sm:$0xff] }
  0x30   :  { %456 = vmatprep.subr.mxu0 %v2460_v47  ;;  %527 = vmatprep.subr.mxu1 %v2462_v48  ;;  %3450 = vst [vmem:[#allocation29_spill] sm:$0xff] %v2561_v46 }
  0x31   :  { %457 = vmatpush1.msra.mxu0 %v2466_v49  ;;  %528 = vmatpush1.msra.mxu1 %v2468_v50 }
  0x32   :  { %458 = vmatprep.subr.mxu0 %v2472_v51  ;;  %529 = vmatprep.subr.mxu1 %v2474_v52 }
  0x33   :  { %203 = vmatprep.mubr.f32.mxu0 %v3343_v1  ;;  %316 = vmatprep.mubr.f32.mxu1 %v3343_v1 }
  0x34   :  { %459 = vmatpush1.msra.mxu0 %v2480_v53  ;;  %530 = vmatpush1.msra.mxu1 %v2482_v54 }
  0x35   :  { %1970 = vmatmul.mubr.msk.f32.gmra.mxu0 %vm84_vm0, %v51_v55  ;;  %1978 = vmatmul.mubr.msk.f32.gmra.mxu1 %vm84_vm0, %v51_v55  ;;  %v2565_v55 = vld [vmem:[#allocation6 + $0x8] sm:$0xff] }
  0x36   :  { %460 = vmatprep.subr.mxu0 %v2491_v56  ;;  %531 = vmatprep.subr.mxu1 %v2493_v57  ;;  %3451 = vst [vmem:[#allocation30_spill] sm:$0xff] %v2565_v55 }
  0x37   :  { %461 = vmatpush1.msra.mxu0 %v2497_v58  ;;  %532 = vmatpush1.msra.mxu1 %v2499_v59 }
  0x38   :  { %462 = vmatprep.subr.mxu0 %v2503_v60  ;;  %533 = vmatprep.subr.mxu1 %v2505_v61 }
  0x39   :  { %209 = vmatprep.mubr.f32.mxu0 %v3343_v1  ;;  %322 = vmatprep.mubr.f32.mxu1 %v3343_v1 }
  0x3a   :  { %463 = vmatpush1.msra.mxu0 %v2511_v62  ;;  %534 = vmatpush1.msra.mxu1 %v2513_v63 }
  0x3b   :  { %1971 = vmatmul.mubr.msk.f32.gmra.mxu0 %vm84_vm0, %v52_v0  ;;  %1979 = vmatmul.mubr.msk.f32.gmra.mxu1 %vm84_vm0, %v52_v0  ;;  %v2567_v0 = vld [vmem:[#allocation6 + $0x18] sm:$0xff] }
  0x3c   :  { %464 = vmatprep.subr.mxu0 %v2522_v2  ;;  %535 = vmatprep.subr.mxu1 %v2524_v3  ;;  %3452 = vst [vmem:[#allocation31_spill] sm:$0xff] %v2567_v0 }
  0x3d   :  { %465 = vmatpush1.msra.mxu0 %v2528_v4  ;;  %536 = vmatpush1.msra.mxu1 %v2530_v5 }
  0x3e   :  { %466 = vmatprep.subr.mxu0 %v2534_v6  ;;  %537 = vmatprep.subr.mxu1 %v2536_v7 }
  0x3f   :  { %215 = vmatprep.mubr.f32.mxu0 %v3343_v1  ;;  %328 = vmatprep.mubr.f32.mxu1 %v3343_v1  ;;  %v2571_v1 = vld [vmem:[#allocation6] sm:$0xff] }
  0x40   :  { %467 = vmatpush1.msra.mxu0 %v2542_v8  ;;  %538 = vmatpush1.msra.mxu1 %v2544_v9  ;;  %3453 = vst [vmem:[#allocation32_spill] sm:$0xff] %v2571_v1  ;;  %v2575_v9 = vld [vmem:[#allocation6 + $0x10] sm:$0xff] }
  0x41   :  { %1972 = vmatmul.mubr.msk.f32.gmra.mxu0 %vm84_vm0, %v53_v10  ;;  %1980 = vmatmul.mubr.msk.f32.gmra.mxu1 %vm84_vm0, %v53_v10  ;;  %3454 = vst [vmem:[#allocation33_spill] sm:$0xff] %v2575_v9  ;;  %v3455_v10 = vmov 0.0  }
  0x42   :  { %468 = vmatprep.subr.mxu0 %v2553_v19  ;;  %539 = vmatprep.subr.mxu1 %v2555_v28 }
  0x43   :  { %469 = vmatpush1.msra.mxu0 %v2559_v37  ;;  %540 = vmatpush1.msra.mxu1 %v2561_v46 }
  0x44   :  { %470 = vmatprep.subr.mxu0 %v2565_v55  ;;  %541 = vmatprep.subr.mxu1 %v2567_v0 }
  0x45   :  { %471 = vmatpush1.msra.mxu0 %v2571_v1  ;;  %504 = vmatprep.mubr.f32.mxu0 %v3455_v10 }
  0x46   :  { %542 = vmatpush1.msra.mxu1 %v2575_v9  ;;  %575 = vmatprep.mubr.f32.mxu1 %v3455_v10 }
  0x47   :  { %505 = vmatmul.mubr.f32.vlgmr.msra.gmra.mxu0 %v3455_v10  ;;  %576 = vmatmul.mubr.f32.vlgmr.msra.gmra.mxu1 %v3455_v10 }
  0x48   :  { %617 = vmatprep.subr.mxu0 %v2338_v11  ;;  %688 = vmatprep.subr.mxu1 %v2340_v12 }
  0x49   :  { %618 = vmatpush1.msra.mxu0 %v2342_v13  ;;  %689 = vmatpush1.msra.mxu1 %v2344_v14 }
  0x4a   :  { %619 = vmatprep.subr.mxu0 %v2348_v15  ;;  %690 = vmatprep.subr.mxu1 %v2350_v16 }
  0x4b   :  { %620 = vmatpush1.msra.mxu0 %v2356_v17  ;;  %691 = vmatpush1.msra.mxu1 %v2358_v18 }
  0x4c   :  { %621 = vmatprep.subr.mxu0 %v2367_v20  ;;  %692 = vmatprep.subr.mxu1 %v2369_v21 }
  0x4d   :  { %622 = vmatpush1.msra.mxu0 %v2373_v22  ;;  %693 = vmatpush1.msra.mxu1 %v2375_v23 }
  0x4e   :  { %623 = vmatprep.subr.mxu0 %v2379_v24  ;;  %694 = vmatprep.subr.mxu1 %v2381_v25 }
  0x4f   :  { %624 = vmatpush1.msra.mxu0 %v2387_v26  ;;  %695 = vmatpush1.msra.mxu1 %v2389_v27 }
  0x50   :  { %625 = vmatprep.subr.mxu0 %v2398_v29  ;;  %696 = vmatprep.subr.mxu1 %v2400_v30 }
  0x51   :  { %626 = vmatpush1.msra.mxu0 %v2404_v31  ;;  %697 = vmatpush1.msra.mxu1 %v2406_v32 }
  0x52   :  { %627 = vmatprep.subr.mxu0 %v2410_v33  ;;  %698 = vmatprep.subr.mxu1 %v2412_v34 }
  0x53   :  { %628 = vmatpush1.msra.mxu0 %v2418_v35  ;;  %699 = vmatpush1.msra.mxu1 %v2420_v36 }
  0x54   :  { %629 = vmatprep.subr.mxu0 %v2429_v38  ;;  %700 = vmatprep.subr.mxu1 %v2431_v39 }
  0x55   :  { %630 = vmatpush1.msra.mxu0 %v2435_v40  ;;  %701 = vmatpush1.msra.mxu1 %v2437_v41 }
  0x56   :  { %631 = vmatprep.subr.mxu0 %v2441_v42  ;;  %702 = vmatprep.subr.mxu1 %v2443_v43 }
  0x57   :  { %632 = vmatpush1.msra.mxu0 %v2449_v44  ;;  %703 = vmatpush1.msra.mxu1 %v2451_v45 }
  0x58   :  { %633 = vmatprep.subr.mxu0 %v2460_v47  ;;  %704 = vmatprep.subr.mxu1 %v2462_v48 }
  0x59   :  { %634 = vmatpush1.msra.mxu0 %v2466_v49  ;;  %705 = vmatpush1.msra.mxu1 %v2468_v50 }
  0x5a   :  { %635 = vmatprep.subr.mxu0 %v2472_v51  ;;  %706 = vmatprep.subr.mxu1 %v2474_v52 }
  0x5b   :  { %636 = vmatpush1.msra.mxu0 %v2480_v53  ;;  %707 = vmatpush1.msra.mxu1 %v2482_v54 }
  0x5c   :  { %637 = vmatprep.subr.mxu0 %v2491_v56  ;;  %708 = vmatprep.subr.mxu1 %v2493_v57 }
  0x5d   :  { %638 = vmatpush1.msra.mxu0 %v2497_v58  ;;  %709 = vmatpush1.msra.mxu1 %v2499_v59 }
  0x5e   :  { %639 = vmatprep.subr.mxu0 %v2503_v60  ;;  %710 = vmatprep.subr.mxu1 %v2505_v61  ;;  %v3456_v60 = vld [vmem:[#allocation25_spill] sm:$0xff] }
  0x5f   :  { %640 = vmatpush1.msra.mxu0 %v2511_v62  ;;  %711 = vmatpush1.msra.mxu1 %v2513_v63 }
  0x60   :  { %641 = vmatprep.subr.mxu0 %v2522_v2  ;;  %712 = vmatprep.subr.mxu1 %v2524_v3 }
  0x61   :  { %642 = vmatpush1.msra.mxu0 %v2528_v4  ;;  %713 = vmatpush1.msra.mxu1 %v2530_v5 }
  0x62   :  { %643 = vmatprep.subr.mxu0 %v2534_v6  ;;  %714 = vmatprep.subr.mxu1 %v2536_v7 }
  0x63   :  { %644 = vmatpush1.msra.mxu0 %v2542_v8  ;;  %715 = vmatpush1.msra.mxu1 %v3456_v60 }
  0x64   :  { %645 = vmatprep.subr.mxu0 %v2553_v19  ;;  %716 = vmatprep.subr.mxu1 %v2555_v28  ;;  %v64_v28 = vlaneseq }
  0x65   :  { %646 = vmatpush1.msra.mxu0 %v2559_v37  ;;  %717 = vmatpush1.msra.mxu1 %v2561_v46 }
  0x66   :  { %647 = vmatprep.subr.mxu0 %v2565_v55  ;;  %718 = vmatprep.subr.mxu1 %v2567_v0  ;;  %v2653_v37 = vshrl.u32 %v64_v28, 7 }
  0x67   :  { %648 = vmatpush1.msra.mxu0 %v2571_v1  ;;  %681 = vmatprep.mubr.f32.mxu0 %v3455_v10 }
  0x68   :  { %719 = vmatpush1.msra.mxu1 %v2575_v9  ;;  %752 = vmatprep.mubr.f32.mxu1 %v3455_v10  ;;  %3457 = vst [vmem:[#allocation34_spill] sm:$0xff] %v2653_v37  ;;  %v3388_v0 = vsub.s32 0, %v2653_v37  ;;  %v74_v1 = vsub.s32 2, %v2653_v37  ;;  %v62_v9 = vld [vmem:[%s3339_s3] sm:$0xf]  ;;  %v78_v28 = vsub.s32 3, %v2653_v37 }
  0x69   :  { %794 = vmatprep.subr.mxu0 %v2338_v11  ;;  %865 = vmatprep.subr.mxu1 %v2340_v12  ;;  %v70_v12 = vsub.s32 1, %v2653_v37 }
  0x6a   :  { %v67_v19 = vrot.slane %v62_v9, %v3388_v0  ;;  %v2672_v60 = vrot.slane %v62_v9, %v74_v1  ;;  %v2674_v5 = vrot.slane %v62_v9, %v78_v28 }
  0x6b   :  { %v71_v6 = vrot.slane %v62_v9, %v70_v12 }
  0xd7   :  { %v2655_v46 = vpop.f32.mrf.mxu0  ;;  %v2657_v55 = vpop.f32.mrf.mxu1 }
  0xd9   :  { %v2664_v10 = vpop.f32.mrf.mxu0  ;;  %v2666_v11 = vpop.f32.mrf.mxu1 }
  0xdd   :  { %v181_v8 = vpop.f32.mrf.mxu0  ;;  %v294_v7 = vpop.f32.mrf.mxu1 }
  0xde   :  { %v2676_v4 = vadd.f32 %v181_v8, %v67_v19  ;;  %v2679_v3 = vadd.f32 %v294_v7, %v2672_v60 }
  0xdf   :  { %v183_v2 = vpop.f32.mrf.mxu0  ;;  %v296_v63 = vpop.f32.mrf.mxu1 }
  0xe0   :  { %3458 = vst [vmem:[#allocation35_spill] sm:$0xff] %v2676_v4  ;;  %3459 = vst [vmem:[#allocation36_spill] sm:$0xff] %v2679_v3  ;;  %v2681_v62 = vadd.f32 %v183_v2, %v71_v6  ;;  %v2684_v61 = vadd.f32 %v296_v63, %v2674_v5 }
  0xe2   :  { %3460 = vst [vmem:[#allocation37_spill] sm:$0xff] %v2681_v62  ;;  %3461 = vst [vmem:[#allocation38_spill] sm:$0xff] %v2684_v61 }
  0xe3   :  { %v187_v0 = vpop.f32.mrf.mxu0  ;;  %v300_v1 = vpop.f32.mrf.mxu1 }
  0xe4   :  { %v2686_v37 = vadd.f32 %v187_v0, %v67_v19  ;;  %v2689_v12 = vadd.f32 %v300_v1, %v2672_v60 }
  0xe5   :  { %v189_v9 = vpop.f32.mrf.mxu0  ;;  %v302_v8 = vpop.f32.mrf.mxu1 }
  0xe6   :  { %3462 = vst [vmem:[#allocation39_spill] sm:$0xff] %v2686_v37  ;;  %3463 = vst [vmem:[#allocation40_spill] sm:$0xff] %v2689_v12  ;;  %v2691_v28 = vadd.f32 %v189_v9, %v71_v6  ;;  %v2694_v7 = vadd.f32 %v302_v8, %v2674_v5 }
  0xe8   :  { %3464 = vst [vmem:[#allocation41_spill] sm:$0xff] %v2691_v28  ;;  %3465 = vst [vmem:[#allocation42_spill] sm:$0xff] %v2694_v7 }
  0xe9   :  { %v193_v3 = vpop.f32.mrf.mxu0  ;;  %v306_v2 = vpop.f32.mrf.mxu1 }
  0xea   :  { %v2696_v62 = vadd.f32 %v193_v3, %v67_v19  ;;  %v2699_v63 = vadd.f32 %v306_v2, %v2672_v60 }
  0xeb   :  { %v195_v61 = vpop.f32.mrf.mxu0  ;;  %v308_v0 = vpop.f32.mrf.mxu1 }
  0xec   :  { %3466 = vst [vmem:[#allocation43_spill] sm:$0xff] %v2696_v62  ;;  %3467 = vst [vmem:[#allocation44_spill] sm:$0xff] %v2699_v63  ;;  %v2701_v37 = vadd.f32 %v195_v61, %v71_v6  ;;  %v2704_v1 = vadd.f32 %v308_v0, %v2674_v5 }
  0xee   :  { %3468 = vst [vmem:[#allocation45_spill] sm:$0xff] %v2701_v37  ;;  %3469 = vst [vmem:[#allocation46_spill] sm:$0xff] %v2704_v1 }
  0xef   :  { %v199_v12 = vpop.f32.mrf.mxu0  ;;  %v312_v9 = vpop.f32.mrf.mxu1 }
  0xf0   :  { %v2706_v28 = vadd.f32 %v199_v12, %v67_v19  ;;  %v2709_v8 = vadd.f32 %v312_v9, %v2672_v60 }
  0xf1   :  { %v201_v7 = vpop.f32.mrf.mxu0  ;;  %v314_v3 = vpop.f32.mrf.mxu1 }
  0xf2   :  { %3470 = vst [vmem:[#allocation47_spill] sm:$0xff] %v2706_v28  ;;  %3471 = vst [vmem:[#allocation48_spill] sm:$0xff] %v2709_v8  ;;  %v2711_v62 = vadd.f32 %v201_v7, %v71_v6  ;;  %v2714_v2 = vadd.f32 %v314_v3, %v2674_v5 }
  0xf4   :  { %3472 = vst [vmem:[#allocation49_spill] sm:$0xff] %v2711_v62  ;;  %3473 = vst [vmem:[#allocation50_spill] sm:$0xff] %v2714_v2 }
  0xf5   :  { %v205_v63 = vpop.f32.mrf.mxu0  ;;  %v318_v61 = vpop.f32.mrf.mxu1 }
  0xf6   :  { %v2716_v37 = vadd.f32 %v205_v63, %v67_v19  ;;  %v2719_v0 = vadd.f32 %v318_v61, %v2672_v60 }
  0xf7   :  { %v207_v1 = vpop.f32.mrf.mxu0  ;;  %v320_v12 = vpop.f32.mrf.mxu1 }
  0xf8   :  { %3474 = vst [vmem:[#allocation51_spill] sm:$0xff] %v2716_v37  ;;  %3475 = vst [vmem:[#allocation52_spill] sm:$0xff] %v2719_v0  ;;  %v2721_v28 = vadd.f32 %v207_v1, %v71_v6  ;;  %v2724_v9 = vadd.f32 %v320_v12, %v2674_v5 }
  0xfa   :  { %3476 = vst [vmem:[#allocation53_spill] sm:$0xff] %v2721_v28  ;;  %3477 = vst [vmem:[#allocation54_spill] sm:$0xff] %v2724_v9 }
  0xfb   :  { %v211_v8 = vpop.f32.mrf.mxu0  ;;  %v324_v7 = vpop.f32.mrf.mxu1 }
  0xfc   :  { %v2726_v62 = vadd.f32 %v211_v8, %v67_v19  ;;  %v2729_v3 = vadd.f32 %v324_v7, %v2672_v60 }
  0xfd   :  { %v213_v2 = vpop.f32.mrf.mxu0  ;;  %v326_v63 = vpop.f32.mrf.mxu1 }
  0xfe   :  { %3478 = vst [vmem:[#allocation55_spill] sm:$0xff] %v2726_v62  ;;  %3479 = vst [vmem:[#allocation56_spill] sm:$0xff] %v2729_v3  ;;  %v2731_v37 = vadd.f32 %v213_v2, %v71_v6  ;;  %v2734_v61 = vadd.f32 %v326_v63, %v2674_v5  ;;  %v176_v2 = vadd.f32 %v2655_v46, %v67_v19 }
  0xff   :  { %v178_v63 = vadd.f32 %v2664_v10, %v71_v6 }
 0x100   :  { %3480 = vst [vmem:[#allocation57_spill] sm:$0xff] %v2731_v37  ;;  %3481 = vst [vmem:[#allocation58_spill] sm:$0xff] %v2734_v61 }
 0x101   :  { %v217_v0 = vpop.f32.mrf.mxu0  ;;  %v330_v1 = vpop.f32.mrf.mxu1 }
 0x102   :  { %v2736_v28 = vadd.f32 %v217_v0, %v67_v19  ;;  %v2739_v12 = vadd.f32 %v330_v1, %v2672_v60 }
 0x103   :  { %v219_v9 = vpop.f32.mrf.mxu0  ;;  %v332_v8 = vpop.f32.mrf.mxu1 }
 0x104   :  { %3482 = vst [vmem:[#allocation59_spill] sm:$0xff] %v2736_v28  ;;  %3483 = vst [vmem:[#allocation60_spill] sm:$0xff] %v2739_v12  ;;  %v2741_v62 = vadd.f32 %v219_v9, %v71_v6  ;;  %v2744_v7 = vadd.f32 %v332_v8, %v2674_v5  ;;  %v289_v9 = vadd.f32 %v2657_v55, %v2672_v60 }
 0x105   :  { %v291_v8 = vadd.f32 %v2666_v11, %v2674_v5 }
 0x106   :  { %3484 = vst [vmem:[#allocation61_spill] sm:$0xff] %v2741_v62  ;;  %3485 = vst [vmem:[#allocation62_spill] sm:$0xff] %v2744_v7 }
 0x107   :  { %v506_v3 = vpop.f32.mrf.mxu0  ;;  %v577_v1 = vpop.f32.mrf.mxu1 }
 0x108   :  { %v582_v61 = vadd.f32 %v506_v3, %v176_v2  ;;  %v584_v12 = vadd.f32 %v577_v1, %v289_v9  ;;  %v3489_v1 = vld [vmem:[#allocation17_spill] sm:$0xff]  ;;  %v3490_v9 = vld [vmem:[#allocation18_spill] sm:$0xff] }
 0x109   :  { %v508_v37 = vpop.f32.mrf.mxu0  ;;  %v579_v62 = vpop.f32.mrf.mxu1 }
 0x10a   :  { %v1981_v4 = vmul.f32 -1.442695, %v582_v61  ;;  %v583_v0 = vadd.f32 %v508_v37, %v178_v63  ;;  %v1983_v19 = vmul.f32 -1.442695, %v584_v12  ;;  %v585_v7 = vadd.f32 %v579_v62, %v291_v8  ;;  %v3486_v12 = vld [vmem:[#allocation14_spill] sm:$0xff]  ;;  %v3491_v8 = vld [vmem:[#allocation19_spill] sm:$0xff] }
 0x10c   :  { %2021 = vpow2.f32 %v1981_v4  ;;  %v1982_v28 = vmul.f32 -1.442695, %v583_v0  ;;  %v3488_v0 = vld [vmem:[#allocation16_spill] sm:$0xff] }
 0x10e   :  { %2023 = vpow2.f32 %v1982_v28 }
 0x10f   :  { %2025 = vpow2.f32 %v1983_v19  ;;  %v3492_v19 = vld [vmem:[#allocation20_spill] sm:$0xff] }
 0x119   :  { %v2022_v46 = vpop.eup %2021 }
 0x11a   :  { %v595_v6 = vadd.f32 1.0, %v2022_v46  ;;  %v3493_v46 = vld [vmem:[#allocation21_spill] sm:$0xff] }
 0x11b   :  { %v2024_v10 = vpop.eup %2023 }
 0x11c   :  { %2027 = vrcp.f32 %v595_v6  ;;  %v596_v37 = vadd.f32 1.0, %v2024_v10  ;;  %v2026_v4 = vpop.eup %2025  ;;  %v3494_v6 = vld [vmem:[#allocation22_spill] sm:$0xff]  ;;  %v3495_v10 = vld [vmem:[#allocation23_spill] sm:$0xff] }
 0x11d   :  { %2029 = vtanh.f32 %v585_v7  ;;  %v597_v60 = vadd.f32 1.0, %v2026_v4  ;;  %v3487_v7 = vld [vmem:[#allocation15_spill] sm:$0xff]  ;;  %v3497_v4 = vld [vmem:[#allocation25_spill] sm:$0xff] }
 0x11e   :  { %2031 = vrcp.f32 %v596_v37  ;;  %v3496_v37 = vld [vmem:[#allocation24_spill] sm:$0xff] }
 0x11f   :  { %2033 = vrcp.f32 %v597_v60  ;;  %v3501_v60 = vld [vmem:[#allocation29_spill] sm:$0xff] }
 0x129   :  { %v2028_v28 = vpop.eup %2027 }
 0x12a   :  { %v2030_v3 = vpop.eup %2029 }
 0x12b   :  { %v2032_v61 = vpop.eup %2031  ;;  %v606_v2 = vmul.f32 %v2030_v3, %v2028_v28  ;;  %v3498_v28 = vld [vmem:[#allocation26_spill] sm:$0xff]  ;;  %v3499_v3 = vld [vmem:[#allocation27_spill] sm:$0xff] }
 0x12c   :  { %v605_v55 = vmul.f32 0.0, %v2032_v61  ;;  %v2034_v11 = vpop.eup %2033  ;;  %v3500_v61 = vld [vmem:[#allocation28_spill] sm:$0xff] }
 0x12e   :  { %v2752_v63 = vadd.f32 %v606_v2, %v605_v55  ;;  %v3502_v55 = vld [vmem:[#allocation30_spill] sm:$0xff]  ;;  %v3503_v2 = vld [vmem:[#allocation31_spill] sm:$0xff] }
 0x130   :  { %2035 = vtanh.f32 %v2752_v63 }
 0x13d   :  { %v2036_v62 = vpop.eup %2035 }
 0x13e   :  { %v609_v5 = vmul.f32 %v2036_v62, %v2034_v11  ;;  %v3504_v11 = vld [vmem:[#allocation32_spill] sm:$0xff]  ;;  %v3505_v62 = vmov 0.0  }
 0x140   :  { %682 = vmatmul.mubr.f32.vlgmr.msra.gmra.mxu0 %v609_v5  ;;  %753 = vmatmul.mubr.f32.vlgmr.msra.gmra.mxu1 %v609_v5  ;;  %v3506_v5 = vld [vmem:[#allocation33_spill] sm:$0xff] }
 0x141   :  { %795 = vmatpush1.msra.mxu0 %v2342_v13  ;;  %866 = vmatpush1.msra.mxu1 %v2344_v14 }
 0x142   :  { %796 = vmatprep.subr.mxu0 %v2348_v15  ;;  %867 = vmatprep.subr.mxu1 %v2350_v16 }
 0x143   :  { %797 = vmatpush1.msra.mxu0 %v2356_v17  ;;  %868 = vmatpush1.msra.mxu1 %v2358_v18 }
 0x144   :  { %798 = vmatprep.subr.mxu0 %v2367_v20  ;;  %869 = vmatprep.subr.mxu1 %v2369_v21 }
 0x145   :  { %799 = vmatpush1.msra.mxu0 %v2373_v22  ;;  %870 = vmatpush1.msra.mxu1 %v2375_v23 }
 0x146   :  { %800 = vmatprep.subr.mxu0 %v2379_v24  ;;  %871 = vmatprep.subr.mxu1 %v2381_v25 }
 0x147   :  { %801 = vmatpush1.msra.mxu0 %v2387_v26  ;;  %872 = vmatpush1.msra.mxu1 %v2389_v27 }
 0x148   :  { %802 = vmatprep.subr.mxu0 %v2398_v29  ;;  %873 = vmatprep.subr.mxu1 %v2400_v30 }
 0x149   :  { %803 = vmatpush1.msra.mxu0 %v2404_v31  ;;  %874 = vmatpush1.msra.mxu1 %v2406_v32 }
 0x14a   :  { %804 = vmatprep.subr.mxu0 %v2410_v33  ;;  %875 = vmatprep.subr.mxu1 %v2412_v34 }
 0x14b   :  { %805 = vmatpush1.msra.mxu0 %v2418_v35  ;;  %876 = vmatpush1.msra.mxu1 %v2420_v36 }
 0x14c   :  { %806 = vmatprep.subr.mxu0 %v2429_v38  ;;  %877 = vmatprep.subr.mxu1 %v2431_v39 }
 0x14d   :  { %807 = vmatpush1.msra.mxu0 %v2435_v40  ;;  %878 = vmatpush1.msra.mxu1 %v2437_v41 }
 0x14e   :  { %808 = vmatprep.subr.mxu0 %v2441_v42  ;;  %879 = vmatprep.subr.mxu1 %v2443_v43 }
 0x14f   :  { %809 = vmatpush1.msra.mxu0 %v2449_v44  ;;  %880 = vmatpush1.msra.mxu1 %v2451_v45 }
 0x150   :  { %810 = vmatprep.subr.mxu0 %v2460_v47  ;;  %881 = vmatprep.subr.mxu1 %v2462_v48 }
 0x151   :  { %811 = vmatpush1.msra.mxu0 %v2466_v49  ;;  %882 = vmatpush1.msra.mxu1 %v2468_v50 }
 0x152   :  { %812 = vmatprep.subr.mxu0 %v2472_v51  ;;  %883 = vmatprep.subr.mxu1 %v2474_v52 }
 0x153   :  { %813 = vmatpush1.msra.mxu0 %v2480_v53  ;;  %884 = vmatpush1.msra.mxu1 %v2482_v54 }
 0x154   :  { %814 = vmatprep.subr.mxu0 %v2491_v56  ;;  %885 = vmatprep.subr.mxu1 %v2493_v57 }
 0x155   :  { %815 = vmatpush1.msra.mxu0 %v2497_v58  ;;  %886 = vmatpush1.msra.mxu1 %v2499_v59 }
 0x156   :  { %816 = vmatprep.subr.mxu0 %v3486_v12  ;;  %887 = vmatprep.subr.mxu1 %v3487_v7 }
 0x157   :  { %817 = vmatpush1.msra.mxu0 %v3488_v0  ;;  %888 = vmatpush1.msra.mxu1 %v3489_v1 }
 0x158   :  { %818 = vmatprep.subr.mxu0 %v3490_v9  ;;  %889 = vmatprep.subr.mxu1 %v3491_v8 }
 0x159   :  { %819 = vmatpush1.msra.mxu0 %v3492_v19  ;;  %890 = vmatpush1.msra.mxu1 %v3493_v46  ;;  %v3511_v46 = vld [vmem:[#allocation36_spill] sm:$0xff] }
 0x15a   :  { %820 = vmatprep.subr.mxu0 %v3494_v6  ;;  %891 = vmatprep.subr.mxu1 %v3495_v10 }
 0x15b   :  { %821 = vmatpush1.msra.mxu0 %v3496_v37  ;;  %892 = vmatpush1.msra.mxu1 %v3497_v4  ;;  %v3507_v4 = vld [vmem:[#allocation12_spill] sm:$0xff] }
 0x15c   :  { %822 = vmatprep.subr.mxu0 %v3498_v28  ;;  %893 = vmatprep.subr.mxu1 %v3499_v3  ;;  %v3508_v28 = vld [vmem:[#allocation13_spill] sm:$0xff] }
 0x15d   :  { %823 = vmatpush1.msra.mxu0 %v3500_v61  ;;  %894 = vmatpush1.msra.mxu1 %v3501_v60  ;;  %v3509_v61 = vld [vmem:[#allocation35_spill] sm:$0xff] }
 0x15e   :  { %824 = vmatprep.subr.mxu0 %v3502_v55  ;;  %895 = vmatprep.subr.mxu1 %v3503_v2  ;;  %v3510_v55 = vld [vmem:[#allocation37_spill] sm:$0xff] }
 0x15f   :  { %825 = vmatpush1.msra.mxu0 %v3504_v11  ;;  %858 = vmatprep.mubr.f32.mxu0 %v3505_v62 }
 0x160   :  { %896 = vmatpush1.msra.mxu1 %v3506_v5  ;;  %929 = vmatprep.mubr.f32.mxu1 %v3505_v62  ;;  %v3512_v62 = vld [vmem:[#allocation38_spill] sm:$0xff] }
 0x161   :  { %971 = vmatprep.subr.mxu0 %v3507_v4  ;;  %1042 = vmatprep.subr.mxu1 %v3508_v28 }
 0x200   :  { %v683_v3 = vpop.f32.mrf.mxu0  ;;  %v754_v11 = vpop.f32.mrf.mxu1 }
 0x201   :  { %v759_v37 = vadd.f32 %v683_v3, %v3509_v61  ;;  %v761_v19 = vadd.f32 %v754_v11, %v3511_v46 }
 0x202   :  { %v685_v60 = vpop.f32.mrf.mxu0  ;;  %v756_v5 = vpop.f32.mrf.mxu1 }
 0x203   :  { %v1984_v10 = vmul.f32 -1.442695, %v759_v37  ;;  %v760_v6 = vadd.f32 %v685_v60, %v3510_v55  ;;  %v1986_v8 = vmul.f32 -1.442695, %v761_v19  ;;  %v762_v9 = vadd.f32 %v756_v5, %v3512_v62 }
 0x205   :  { %2037 = vpow2.f32 %v1984_v10  ;;  %v1985_v2 = vmul.f32 -1.442695, %v760_v6 }
 0x207   :  { %2039 = vpow2.f32 %v1985_v2 }
 0x208   :  { %2041 = vpow2.f32 %v1986_v8 }
 0x209   :  { %2043 = vtanh.f32 %v762_v9 }
 0x212   :  { %v2038_v4 = vpop.eup %2037 }
 0x213   :  { %v772_v1 = vadd.f32 1.0, %v2038_v4  ;;  %v3535_v4 = vld [vmem:[#allocation40_spill] sm:$0xff] }
 0x214   :  { %v2040_v28 = vpop.eup %2039 }
 0x215   :  { %2045 = vrcp.f32 %v772_v1  ;;  %v773_v3 = vadd.f32 1.0, %v2040_v28  ;;  %v2042_v37 = vpop.eup %2041  ;;  %v3534_v1 = vld [vmem:[#allocation41_spill] sm:$0xff] }
 0x216   :  { %v2044_v61 = vpop.eup %2043  ;;  %v774_v55 = vadd.f32 1.0, %v2042_v37 }
 0x217   :  { %2047 = vrcp.f32 %v773_v3 }
 0x218   :  { %2049 = vrcp.f32 %v774_v55 }
 0x222   :  { %v2046_v10 = vpop.eup %2045 }
 0x223   :  { %v783_v6 = vmul.f32 %v2046_v10, %v2044_v61  ;;  %v3536_v61 = vld [vmem:[#allocation42_spill] sm:$0xff] }
 0x224   :  { %v2048_v60 = vpop.eup %2047 }
 0x225   :  { %v782_v46 = vmul.f32 %v2048_v60, %v2752_v63  ;;  %v2050_v19 = vpop.eup %2049 }
 0x227   :  { %v2826_v2 = vadd.f32 %v783_v6, %v782_v46 }
 0x229   :  { %2051 = vtanh.f32 %v2826_v2 }
 0x236   :  { %v2052_v8 = vpop.eup %2051 }
 0x237   :  { %v786_v11 = vmul.f32 %v2052_v8, %v2050_v19 }
 0x239   :  { %859 = vmatmul.mubr.f32.vlgmr.msra.gmra.mxu0 %v786_v11  ;;  %930 = vmatmul.mubr.f32.vlgmr.msra.gmra.mxu1 %v786_v11 }
 0x23a   :  { %972 = vmatpush1.msra.mxu0 %v2342_v13  ;;  %1043 = vmatpush1.msra.mxu1 %v2344_v14  ;;  %v3513_v13 = vld [vmem:[#allocation17_spill] sm:$0xff]  ;;  %v3514_v14 = vld [vmem:[#allocation18_spill] sm:$0xff] }
 0x23b   :  { %973 = vmatprep.subr.mxu0 %v2348_v15  ;;  %1044 = vmatprep.subr.mxu1 %v2350_v16  ;;  %v3515_v15 = vld [vmem:[#allocation19_spill] sm:$0xff]  ;;  %v3516_v16 = vld [vmem:[#allocation20_spill] sm:$0xff] }
 0x23c   :  { %974 = vmatpush1.msra.mxu0 %v2356_v17  ;;  %1045 = vmatpush1.msra.mxu1 %v2358_v18  ;;  %v3517_v17 = vld [vmem:[#allocation21_spill] sm:$0xff]  ;;  %v3518_v18 = vld [vmem:[#allocation22_spill] sm:$0xff] }
 0x23d   :  { %975 = vmatprep.subr.mxu0 %v2367_v20  ;;  %1046 = vmatprep.subr.mxu1 %v2369_v21  ;;  %v3519_v20 = vld [vmem:[#allocation23_spill] sm:$0xff]  ;;  %v3520_v21 = vld [vmem:[#allocation24_spill] sm:$0xff] }
 0x23e   :  { %976 = vmatpush1.msra.mxu0 %v2373_v22  ;;  %1047 = vmatpush1.msra.mxu1 %v2375_v23  ;;  %v3521_v22 = vld [vmem:[#allocation25_spill] sm:$0xff]  ;;  %v3522_v23 = vld [vmem:[#allocation26_spill] sm:$0xff] }
 0x23f   :  { %977 = vmatprep.subr.mxu0 %v2379_v24  ;;  %1048 = vmatprep.subr.mxu1 %v2381_v25  ;;  %v3523_v24 = vld [vmem:[#allocation27_spill] sm:$0xff]  ;;  %v3524_v25 = vld [vmem:[#allocation28_spill] sm:$0xff] }
 0x240   :  { %978 = vmatpush1.msra.mxu0 %v2387_v26  ;;  %1049 = vmatpush1.msra.mxu1 %v2389_v27  ;;  %v3525_v26 = vld [vmem:[#allocation29_spill] sm:$0xff]  ;;  %v3526_v27 = vld [vmem:[#allocation30_spill] sm:$0xff] }
 0x241   :  { %979 = vmatprep.subr.mxu0 %v2398_v29  ;;  %1050 = vmatprep.subr.mxu1 %v2400_v30  ;;  %v3527_v29 = vld [vmem:[#allocation31_spill] sm:$0xff]  ;;  %v3528_v30 = vld [vmem:[#allocation32_spill] sm:$0xff] }
 0x242   :  { %980 = vmatpush1.msra.mxu0 %v2404_v31  ;;  %1051 = vmatpush1.msra.mxu1 %v2406_v32  ;;  %v3529_v31 = vmov 0.0   ;;  %v3530_v32 = vld [vmem:[#allocation33_spill] sm:$0xff] }
 0x243   :  { %981 = vmatprep.subr.mxu0 %v2410_v33  ;;  %1052 = vmatprep.subr.mxu1 %v2412_v34  ;;  %v2893_v33 = vld [vmem:[#allocation6 + $0x1e8] sm:$0xff]  ;;  %v2896_v34 = vld [vmem:[#allocation6 + $0x1f8] sm:$0xff] }
 0x244   :  { %982 = vmatpush1.msra.mxu0 %v2418_v35  ;;  %1053 = vmatpush1.msra.mxu1 %v2420_v36  ;;  %3531 = vst [vmem:[#allocation14_spill] sm:$0xff] %v2893_v33  ;;  %3532 = vst [vmem:[#allocation15_spill] sm:$0xff] %v2896_v34  ;;  %v3533_v36 = vld [vmem:[#allocation39_spill] sm:$0xff] }
 0x245   :  { %983 = vmatprep.subr.mxu0 %v2429_v38  ;;  %1054 = vmatprep.subr.mxu1 %v2431_v39 }
 0x246   :  { %984 = vmatpush1.msra.mxu0 %v2435_v40  ;;  %1055 = vmatpush1.msra.mxu1 %v2437_v41 }
 0x247   :  { %985 = vmatprep.subr.mxu0 %v2441_v42  ;;  %1056 = vmatprep.subr.mxu1 %v2443_v43 }
 0x248   :  { %986 = vmatpush1.msra.mxu0 %v2449_v44  ;;  %1057 = vmatpush1.msra.mxu1 %v2451_v45 }
 0x249   :  { %987 = vmatprep.subr.mxu0 %v2460_v47  ;;  %1058 = vmatprep.subr.mxu1 %v2462_v48 }
 0x24a   :  { %988 = vmatpush1.msra.mxu0 %v2466_v49  ;;  %1059 = vmatpush1.msra.mxu1 %v2468_v50 }
 0x24b   :  { %989 = vmatprep.subr.mxu0 %v2472_v51  ;;  %1060 = vmatprep.subr.mxu1 %v2474_v52 }
 0x24c   :  { %990 = vmatpush1.msra.mxu0 %v2480_v53  ;;  %1061 = vmatpush1.msra.mxu1 %v2482_v54 }
 0x24d   :  { %991 = vmatprep.subr.mxu0 %v2491_v56  ;;  %1062 = vmatprep.subr.mxu1 %v2493_v57 }
 0x24e   :  { %992 = vmatpush1.msra.mxu0 %v2497_v58  ;;  %1063 = vmatpush1.msra.mxu1 %v2499_v59 }
 0x24f   :  { %993 = vmatprep.subr.mxu0 %v3486_v12  ;;  %1064 = vmatprep.subr.mxu1 %v3487_v7 }
 0x250   :  { %994 = vmatpush1.msra.mxu0 %v3488_v0  ;;  %1065 = vmatpush1.msra.mxu1 %v3513_v13 }
 0x251   :  { %995 = vmatprep.subr.mxu0 %v3514_v14  ;;  %1066 = vmatprep.subr.mxu1 %v3515_v15 }
 0x252   :  { %996 = vmatpush1.msra.mxu0 %v3516_v16  ;;  %1067 = vmatpush1.msra.mxu1 %v3517_v17 }
 0x253   :  { %997 = vmatprep.subr.mxu0 %v3518_v18  ;;  %1068 = vmatprep.subr.mxu1 %v3519_v20 }
 0x254   :  { %998 = vmatpush1.msra.mxu0 %v3520_v21  ;;  %1069 = vmatpush1.msra.mxu1 %v3521_v22 }
 0x255   :  { %999 = vmatprep.subr.mxu0 %v3522_v23  ;;  %1070 = vmatprep.subr.mxu1 %v3523_v24 }
 0x256   :  { %1000 = vmatpush1.msra.mxu0 %v3524_v25  ;;  %1071 = vmatpush1.msra.mxu1 %v3525_v26 }
 0x257   :  { %1001 = vmatprep.subr.mxu0 %v3526_v27  ;;  %1072 = vmatprep.subr.mxu1 %v3527_v29 }
 0x258   :  { %1002 = vmatpush1.msra.mxu0 %v3528_v30  ;;  %1035 = vmatprep.mubr.f32.mxu0 %v3529_v31 }
 0x259   :  { %1073 = vmatpush1.msra.mxu1 %v3530_v32  ;;  %1106 = vmatprep.mubr.f32.mxu1 %v3529_v31 }
 0x25a   :  { %1148 = vmatprep.subr.mxu0 %v2893_v33  ;;  %1219 = vmatprep.subr.mxu1 %v2896_v34 }
 0x2f9   :  { %v860_v35 = vpop.f32.mrf.mxu0  ;;  %v931_v5 = vpop.f32.mrf.mxu1 }
 0x2fa   :  { %v936_v38 = vadd.f32 %v860_v35, %v3533_v36  ;;  %v938_v28 = vadd.f32 %v931_v5, %v3535_v4  ;;  %v2907_v5 = vld [vmem:[#allocation6 + $0x1e0] sm:$0xff]  ;;  %v2910_v4 = vld [vmem:[#allocation6 + $0x1f0] sm:$0xff] }
 0x2fb   :  { %v862_v39 = vpop.f32.mrf.mxu0  ;;  %v933_v3 = vpop.f32.mrf.mxu1 }
 0x2fc   :  { %v1987_v63 = vmul.f32 -1.442695, %v936_v38  ;;  %v937_v9 = vadd.f32 %v862_v39, %v3534_v1  ;;  %v1989_v37 = vmul.f32 -1.442695, %v938_v28  ;;  %v939_v10 = vadd.f32 %v933_v3, %v3536_v61  ;;  %v2913_v28 = vld [vmem:[#allocation6 + $0x1c8] sm:$0xff]  ;;  %v2919_v3 = vld [vmem:[#allocation6 + $0x1c0] sm:$0xff] }
 0x2fd   :  { %v2925_v61 = vld [vmem:[#allocation6 + $0x1a8] sm:$0xff] }
 0x2fe   :  { %2053 = vpow2.f32 %v1987_v63  ;;  %v1988_v62 = vmul.f32 -1.442695, %v937_v9 }
 0x300   :  { %2055 = vpow2.f32 %v1988_v62 }
 0x301   :  { %2057 = vpow2.f32 %v1989_v37  ;;  %v2922_v37 = vld [vmem:[#allocation6 + $0x1d0] sm:$0xff] }
 0x302   :  { %2059 = vtanh.f32 %v939_v10  ;;  %v2928_v10 = vld [vmem:[#allocation6 + $0x1b8] sm:$0xff] }
 0x30b   :  { %v2054_v6 = vpop.eup %2053 }
 0x30c   :  { %v949_v60 = vadd.f32 1.0, %v2054_v6  ;;  %v2931_v6 = vld [vmem:[#allocation6 + $0x1a0] sm:$0xff] }
 0x30d   :  { %v2056_v55 = vpop.eup %2055 }
 0x30e   :  { %2061 = vrcp.f32 %v949_v60  ;;  %v950_v46 = vadd.f32 1.0, %v2056_v55  ;;  %v2058_v19 = vpop.eup %2057  ;;  %v2934_v60 = vld [vmem:[#allocation6 + $0x1b0] sm:$0xff]  ;;  %v2937_v55 = vld [vmem:[#allocation6 + $0x188] sm:$0xff] }
 0x30f   :  { %v2060_v8 = vpop.eup %2059  ;;  %v951_v38 = vadd.f32 1.0, %v2058_v19  ;;  %v2943_v19 = vld [vmem:[#allocation6 + $0x180] sm:$0xff] }
 0x310   :  { %2063 = vrcp.f32 %v950_v46  ;;  %v2940_v46 = vld [vmem:[#allocation6 + $0x198] sm:$0xff] }
 0x311   :  { %2065 = vrcp.f32 %v951_v38  ;;  %v2958_v38 = vld [vmem:[#allocation6 + $0x170] sm:$0xff] }
 0x312   :  { %3538 = vst [vmem:[#allocation12_spill] sm:$0xff] %v2958_v38 }
 0x31b   :  { %v2062_v11 = vpop.eup %2061 }
 0x31c   :  { %v960_v35 = vmul.f32 %v2062_v11, %v2060_v8  ;;  %v2946_v8 = vld [vmem:[#allocation6 + $0x190] sm:$0xff]  ;;  %v2949_v11 = vld [vmem:[#allocation6 + $0x168] sm:$0xff] }
 0x31d   :  { %v2064_v36 = vpop.eup %2063 }
 0x31e   :  { %v959_v39 = vmul.f32 %v2064_v36, %v2826_v2  ;;  %v2066_v1 = vpop.eup %2065  ;;  %v2916_v2 = vld [vmem:[#allocation6 + $0x1d8] sm:$0xff]  ;;  %v2955_v36 = vld [vmem:[#allocation6 + $0x160] sm:$0xff] }
 0x31f   :  { %3537 = vst [vmem:[#allocation16_spill] sm:$0xff] %v2955_v36 }
 0x320   :  { %v2904_v63 = vadd.f32 %v960_v35, %v959_v39  ;;  %v2952_v35 = vld [vmem:[#allocation6 + $0x178] sm:$0xff]  ;;  %v2961_v39 = vld [vmem:[#allocation6 + $0x148] sm:$0xff] }
 0x322   :  { %2067 = vtanh.f32 %v2904_v63 }
 0x32f   :  { %v2068_v9 = vpop.eup %2067 }
 0x330   :  { %v963_v62 = vmul.f32 %v2068_v9, %v2066_v1  ;;  %v2964_v1 = vld [vmem:[#allocation6 + $0x158] sm:$0xff]  ;;  %v2967_v9 = vld [vmem:[#allocation6 + $0x140] sm:$0xff] }
 0x332   :  { %1036 = vmatmul.mubr.f32.vlgmr.msra.gmra.mxu0 %v963_v62  ;;  %1107 = vmatmul.mubr.f32.vlgmr.msra.gmra.mxu1 %v963_v62  ;;  %v2970_v62 = vld [vmem:[#allocation6 + $0x150] sm:$0xff] }
 0x333   :  { %1149 = vmatpush1.msra.mxu0 %v2907_v5  ;;  %1220 = vmatpush1.msra.mxu1 %v2910_v4 }
 0x334   :  { %1150 = vmatprep.subr.mxu0 %v2913_v28  ;;  %1221 = vmatprep.subr.mxu1 %v2916_v2 }
 0x335   :  { %1151 = vmatpush1.msra.mxu0 %v2919_v3  ;;  %1222 = vmatpush1.msra.mxu1 %v2922_v37 }
 0x336   :  { %1152 = vmatprep.subr.mxu0 %v2925_v61  ;;  %1223 = vmatprep.subr.mxu1 %v2928_v10 }
 0x337   :  { %1153 = vmatpush1.msra.mxu0 %v2931_v6  ;;  %1224 = vmatpush1.msra.mxu1 %v2934_v60 }
 0x338   :  { %1154 = vmatprep.subr.mxu0 %v2937_v55  ;;  %1225 = vmatprep.subr.mxu1 %v2940_v46 }
 0x339   :  { %1155 = vmatpush1.msra.mxu0 %v2943_v19  ;;  %1226 = vmatpush1.msra.mxu1 %v2946_v8 }
 0x33a   :  { %1156 = vmatprep.subr.mxu0 %v2949_v11  ;;  %1227 = vmatprep.subr.mxu1 %v2952_v35 }
 0x33b   :  { %1157 = vmatpush1.msra.mxu0 %v2955_v36  ;;  %1228 = vmatpush1.msra.mxu1 %v2958_v38  ;;  %v2973_v36 = vld [vmem:[#allocation6 + $0x128] sm:$0xff]  ;;  %v2976_v38 = vld [vmem:[#allocation6 + $0x138] sm:$0xff] }
 0x33c   :  { %1158 = vmatprep.subr.mxu0 %v2961_v39  ;;  %1229 = vmatprep.subr.mxu1 %v2964_v1 }
 0x33d   :  { %1159 = vmatpush1.msra.mxu0 %v2967_v9  ;;  %1230 = vmatpush1.msra.mxu1 %v2970_v62 }
 0x33e   :  { %1160 = vmatprep.subr.mxu0 %v2973_v36  ;;  %1231 = vmatprep.subr.mxu1 %v2976_v38 }
 0x33f   :  { %1161 = vmatpush1.msra.mxu0 %v2435_v40  ;;  %1232 = vmatpush1.msra.mxu1 %v2437_v41  ;;  %v3539_v41 = vld [vmem:[#allocation43_spill] sm:$0xff] }
 0x340   :  { %1162 = vmatprep.subr.mxu0 %v2441_v42  ;;  %1233 = vmatprep.subr.mxu1 %v2443_v43 }
 0x341   :  { %1163 = vmatpush1.msra.mxu0 %v2449_v44  ;;  %1234 = vmatpush1.msra.mxu1 %v2451_v45  ;;  %v3540_v45 = vld [vmem:[#allocation45_spill] sm:$0xff] }
 0x342   :  { %1164 = vmatprep.subr.mxu0 %v2460_v47  ;;  %1235 = vmatprep.subr.mxu1 %v2462_v48 }
 0x343   :  { %1165 = vmatpush1.msra.mxu0 %v2466_v49  ;;  %1236 = vmatpush1.msra.mxu1 %v2468_v50  ;;  %v3541_v50 = vld [vmem:[#allocation44_spill] sm:$0xff] }
 0x344   :  { %1166 = vmatprep.subr.mxu0 %v2472_v51  ;;  %1237 = vmatprep.subr.mxu1 %v2474_v52 }
 0x345   :  { %1167 = vmatpush1.msra.mxu0 %v2480_v53  ;;  %1238 = vmatpush1.msra.mxu1 %v2482_v54  ;;  %v3542_v54 = vld [vmem:[#allocation46_spill] sm:$0xff] }
 0x346   :  { %1168 = vmatprep.subr.mxu0 %v2491_v56  ;;  %1239 = vmatprep.subr.mxu1 %v2493_v57 }
 0x347   :  { %1169 = vmatpush1.msra.mxu0 %v2497_v58  ;;  %1240 = vmatpush1.msra.mxu1 %v2499_v59 }
 0x348   :  { %1170 = vmatprep.subr.mxu0 %v3486_v12  ;;  %1241 = vmatprep.subr.mxu1 %v3487_v7 }
 0x349   :  { %1171 = vmatpush1.msra.mxu0 %v3488_v0  ;;  %1242 = vmatpush1.msra.mxu1 %v3513_v13 }
 0x34a   :  { %1172 = vmatprep.subr.mxu0 %v3514_v14  ;;  %1243 = vmatprep.subr.mxu1 %v3515_v15 }
 0x34b   :  { %1173 = vmatpush1.msra.mxu0 %v3516_v16  ;;  %1244 = vmatpush1.msra.mxu1 %v3517_v17 }
 0x34c   :  { %1174 = vmatprep.subr.mxu0 %v3518_v18  ;;  %1245 = vmatprep.subr.mxu1 %v3519_v20 }
 0x34d   :  { %1175 = vmatpush1.msra.mxu0 %v3520_v21  ;;  %1246 = vmatpush1.msra.mxu1 %v3521_v22 }
 0x34e   :  { %1176 = vmatprep.subr.mxu0 %v3522_v23  ;;  %1247 = vmatprep.subr.mxu1 %v3523_v24  ;;  %v3543_v23 = vld [vmem:[#allocation16_spill] sm:$0xff] }
 0x34f   :  { %1177 = vmatpush1.msra.mxu0 %v3524_v25  ;;  %1248 = vmatpush1.msra.mxu1 %v3525_v26  ;;  %v3544_v24 = vld [vmem:[#allocation12_spill] sm:$0xff]  ;;  %v3056_v26 = vld [vmem:[#allocation6 + $0x130] sm:$0xff] }
 0x350   :  { %1178 = vmatprep.subr.mxu0 %v3526_v27  ;;  %1249 = vmatprep.subr.mxu1 %v3527_v29  ;;  %v3053_v25 = vld [vmem:[#allocation6 + $0x120] sm:$0xff]  ;;  %v3059_v27 = vld [vmem:[#allocation6 + $0x108] sm:$0xff]  ;;  %v3062_v29 = vld [vmem:[#allocation6 + $0x118] sm:$0xff] }
 0x351   :  { %1179 = vmatpush1.msra.mxu0 %v3528_v30  ;;  %1212 = vmatprep.mubr.f32.mxu0 %v3529_v31  ;;  %v3065_v30 = vld [vmem:[#allocation6 + $0x100] sm:$0xff] }
 0x352   :  { %1250 = vmatpush1.msra.mxu1 %v3530_v32  ;;  %1283 = vmatprep.mubr.f32.mxu1 %v3529_v31  ;;  %v3068_v32 = vld [vmem:[#allocation6 + $0x110] sm:$0xff] }
 0x353   :  { %1325 = vmatprep.subr.mxu0 %v2893_v33  ;;  %1396 = vmatprep.subr.mxu1 %v2896_v34 }
 0x3f2   :  { %v1037_v40 = vpop.f32.mrf.mxu0  ;;  %v1108_v49 = vpop.f32.mrf.mxu1 }
 0x3f3   :  { %v1113_v42 = vadd.f32 %v1037_v40, %v3539_v41  ;;  %v1115_v51 = vadd.f32 %v1108_v49, %v3541_v50  ;;  %v3074_v40 = vld [vmem:[#allocation6 + $0xf8] sm:$0xff]  ;;  %v3077_v41 = vld [vmem:[#allocation6 + $0xe0] sm:$0xff] }
 0x3f4   :  { %v1039_v43 = vpop.f32.mrf.mxu0  ;;  %v1110_v52 = vpop.f32.mrf.mxu1  ;;  %v3098_v49 = vld [vmem:[#allocation6 + $0xb8] sm:$0xff]  ;;  %v3101_v50 = vld [vmem:[#allocation6 + $0xa0] sm:$0xff] }
 0x3f5   :  { %v1990_v44 = vmul.f32 -1.442695, %v1113_v42  ;;  %v1114_v47 = vadd.f32 %v1039_v43, %v3540_v45  ;;  %v1992_v53 = vmul.f32 -1.442695, %v1115_v51  ;;  %v1116_v56 = vadd.f32 %v1110_v52, %v3542_v54  ;;  %v3080_v42 = vld [vmem:[#allocation6 + $0xf0] sm:$0xff]  ;;  %v3083_v43 = vld [vmem:[#allocation6 + $0xc8] sm:$0xff] }
 0x3f6   :  { %v3089_v45 = vld [vmem:[#allocation6 + $0xc0] sm:$0xff]  ;;  %v3104_v51 = vld [vmem:[#allocation6 + $0xb0] sm:$0xff]  ;;  %v3107_v52 = vld [vmem:[#allocation6 + $0x88] sm:$0xff] }
 0x3f7   :  { %2069 = vpow2.f32 %v1990_v44  ;;  %v1991_v48 = vmul.f32 -1.442695, %v1114_v47  ;;  %v3086_v44 = vld [vmem:[#allocation6 + $0xd8] sm:$0xff]  ;;  %v3092_v47 = vld [vmem:[#allocation6 + $0xd0] sm:$0xff]  ;;  %v3113_v54 = vld [vmem:[#allocation6 + $0x80] sm:$0xff] }
 0x3f9   :  { %2071 = vpow2.f32 %v1991_v48  ;;  %v3095_v48 = vld [vmem:[#allocation6 + $0xa8] sm:$0xff] }
 0x3fa   :  { %2073 = vpow2.f32 %v1992_v53  ;;  %v3110_v53 = vld [vmem:[#allocation6 + $0x98] sm:$0xff] }
 0x3fb   :  { %2075 = vtanh.f32 %v1116_v56  ;;  %v3116_v56 = vld [vmem:[#allocation6 + $0x90] sm:$0xff] }
 0x3fc   :  { %3545 = vst [vmem:[#allocation13_spill] sm:$0xff] %v3116_v56 }
 0x404   :  { %v2070_v57 = vpop.eup %2069 }
 0x405   :  { %v1126_v58 = vadd.f32 1.0, %v2070_v57  ;;  %v3119_v57 = vld [vmem:[#allocation6 + $0x68] sm:$0xff] }
 0x406   :  { %v2072_v59 = vpop.eup %2071  ;;  %3546 = vst [vmem:[#allocation35_spill] sm:$0xff] %v3119_v57 }
 0x407   :  { %2077 = vrcp.f32 %v1126_v58  ;;  %v1127_v12 = vadd.f32 1.0, %v2072_v59  ;;  %v2074_v7 = vpop.eup %2073  ;;  %v3122_v58 = vld [vmem:[#allocation6 + $0x78] sm:$0xff]  ;;  %v3125_v59 = vld [vmem:[#allocation6 + $0x60] sm:$0xff] }
 0x408   :  { %v2076_v0 = vpop.eup %2075  ;;  %v1128_v16 = vadd.f32 1.0, %v2074_v7  ;;  %3547 = vst [vmem:[#allocation37_spill] sm:$0xff] %v3122_v58  ;;  %3548 = vst [vmem:[#allocation36_spill] sm:$0xff] %v3125_v59  ;;  %v3131_v7 = vld [vmem:[#allocation6 + $0x48] sm:$0xff] }
 0x409   :  { %2079 = vrcp.f32 %v1127_v12  ;;  %v3128_v12 = vld [vmem:[#allocation6 + $0x70] sm:$0xff]  ;;  %3550 = vst [vmem:[#allocation17_spill] sm:$0xff] %v3131_v7 }
 0x40a   :  { %2081 = vrcp.f32 %v1128_v16  ;;  %3549 = vst [vmem:[#allocation38_spill] sm:$0xff] %v3128_v12  ;;  %v3146_v16 = vld [vmem:[#allocation6 + $0x38] sm:$0xff] }
 0x40b   :  { %3555 = vst [vmem:[#allocation22_spill] sm:$0xff] %v3146_v16 }
 0x414   :  { %v2078_v13 = vpop.eup %2077 }
 0x415   :  { %v1137_v14 = vmul.f32 %v2078_v13, %v2076_v0  ;;  %v3134_v0 = vld [vmem:[#allocation6 + $0x58] sm:$0xff]  ;;  %v3137_v13 = vld [vmem:[#allocation6 + $0x40] sm:$0xff] }
 0x416   :  { %v2080_v15 = vpop.eup %2079  ;;  %3551 = vst [vmem:[#allocation18_spill] sm:$0xff] %v3134_v0  ;;  %3552 = vst [vmem:[#allocation19_spill] sm:$0xff] %v3137_v13 }
 0x417   :  { %v1136_v17 = vmul.f32 %v2080_v15, %v2904_v63  ;;  %v2082_v20 = vpop.eup %2081  ;;  %v3071_v63 = vld [vmem:[#allocation6 + $0xe8] sm:$0xff] }
 0x418   :  { %v3143_v15 = vld [vmem:[#allocation6 + $0x28] sm:$0xff] }
 0x419   :  { %v3026_v18 = vadd.f32 %v1137_v14, %v1136_v17  ;;  %v3140_v14 = vld [vmem:[#allocation6 + $0x50] sm:$0xff]  ;;  %3554 = vst [vmem:[#allocation21_spill] sm:$0xff] %v3143_v15  ;;  %v3149_v17 = vld [vmem:[#allocation6 + $0x20] sm:$0xff] }
 0x41a   :  { %3553 = vst [vmem:[#allocation20_spill] sm:$0xff] %v3140_v14  ;;  %3556 = vst [vmem:[#allocation23_spill] sm:$0xff] %v3149_v17 }
 0x41b   :  { %2083 = vtanh.f32 %v3026_v18 }
 0x428   :  { %v2084_v21 = vpop.eup %2083 }
 0x429   :  { %v1140_v22 = vmul.f32 %v2084_v21, %v2082_v20  ;;  %v3152_v20 = vld [vmem:[#allocation6 + $0x30] sm:$0xff]  ;;  %v3155_v21 = vld [vmem:[#allocation6 + $0x8] sm:$0xff] }
 0x42a   :  { %3557 = vst [vmem:[#allocation24_spill] sm:$0xff] %v3152_v20  ;;  %3558 = vst [vmem:[#allocation25_spill] sm:$0xff] %v3155_v21 }
 0x42b   :  { %1213 = vmatmul.mubr.f32.vlgmr.msra.gmra.mxu0 %v1140_v22  ;;  %1284 = vmatmul.mubr.f32.vlgmr.msra.gmra.mxu1 %v1140_v22  ;;  %v3158_v22 = vld [vmem:[#allocation6 + $0x18] sm:$0xff] }
 0x42c   :  { %1326 = vmatpush1.msra.mxu0 %v2907_v5  ;;  %1397 = vmatpush1.msra.mxu1 %v2910_v4  ;;  %3559 = vst [vmem:[#allocation26_spill] sm:$0xff] %v3158_v22 }
 0x42d   :  { %1327 = vmatprep.subr.mxu0 %v2913_v28  ;;  %1398 = vmatprep.subr.mxu1 %v2916_v2 }
 0x42e   :  { %1328 = vmatpush1.msra.mxu0 %v2919_v3  ;;  %1399 = vmatpush1.msra.mxu1 %v2922_v37 }
 0x42f   :  { %1329 = vmatprep.subr.mxu0 %v2925_v61  ;;  %1400 = vmatprep.subr.mxu1 %v2928_v10 }
 0x430   :  { %1330 = vmatpush1.msra.mxu0 %v2931_v6  ;;  %1401 = vmatpush1.msra.mxu1 %v2934_v60 }
 0x431   :  { %1331 = vmatprep.subr.mxu0 %v2937_v55  ;;  %1402 = vmatprep.subr.mxu1 %v2940_v46 }
 0x432   :  { %1332 = vmatpush1.msra.mxu0 %v2943_v19  ;;  %1403 = vmatpush1.msra.mxu1 %v2946_v8 }
 0x433   :  { %1333 = vmatprep.subr.mxu0 %v2949_v11  ;;  %1404 = vmatprep.subr.mxu1 %v2952_v35 }
 0x434   :  { %1334 = vmatpush1.msra.mxu0 %v3543_v23  ;;  %1405 = vmatpush1.msra.mxu1 %v3544_v24 }
 0x435   :  { %1335 = vmatprep.subr.mxu0 %v2961_v39  ;;  %1406 = vmatprep.subr.mxu1 %v2964_v1 }
 0x436   :  { %1336 = vmatpush1.msra.mxu0 %v2967_v9  ;;  %1407 = vmatpush1.msra.mxu1 %v2970_v62 }
 0x437   :  { %1337 = vmatprep.subr.mxu0 %v2973_v36  ;;  %1408 = vmatprep.subr.mxu1 %v2976_v38 }
 0x438   :  { %1338 = vmatpush1.msra.mxu0 %v3053_v25  ;;  %1409 = vmatpush1.msra.mxu1 %v3056_v26 }
 0x439   :  { %1339 = vmatprep.subr.mxu0 %v3059_v27  ;;  %1410 = vmatprep.subr.mxu1 %v3062_v29 }
 0x43a   :  { %1340 = vmatpush1.msra.mxu0 %v3065_v30  ;;  %1411 = vmatpush1.msra.mxu1 %v3068_v32 }
 0x43b   :  { %1341 = vmatprep.subr.mxu0 %v3071_v63  ;;  %1412 = vmatprep.subr.mxu1 %v3074_v40 }
 0x43c   :  { %1342 = vmatpush1.msra.mxu0 %v3077_v41  ;;  %1413 = vmatpush1.msra.mxu1 %v3080_v42 }
 0x43d   :  { %1343 = vmatprep.subr.mxu0 %v3083_v43  ;;  %1414 = vmatprep.subr.mxu1 %v3086_v44 }
 0x43e   :  { %1344 = vmatpush1.msra.mxu0 %v3089_v45  ;;  %1415 = vmatpush1.msra.mxu1 %v3092_v47 }
 0x43f   :  { %1345 = vmatprep.subr.mxu0 %v3095_v48  ;;  %1416 = vmatprep.subr.mxu1 %v3098_v49 }
 0x440   :  { %1346 = vmatpush1.msra.mxu0 %v3101_v50  ;;  %1417 = vmatpush1.msra.mxu1 %v3104_v51 }
 0x441   :  { %1347 = vmatprep.subr.mxu0 %v3107_v52  ;;  %1418 = vmatprep.subr.mxu1 %v3110_v53 }
 0x442   :  { %1348 = vmatpush1.msra.mxu0 %v3113_v54  ;;  %1419 = vmatpush1.msra.mxu1 %v3116_v56 }
 0x443   :  { %1349 = vmatprep.subr.mxu0 %v3119_v57  ;;  %1420 = vmatprep.subr.mxu1 %v3122_v58 }
 0x444   :  { %1350 = vmatpush1.msra.mxu0 %v3125_v59  ;;  %1421 = vmatpush1.msra.mxu1 %v3128_v12  ;;  %v3564_v12 = vld [vmem:[#allocation48_spill] sm:$0xff] }
 0x445   :  { %1351 = vmatprep.subr.mxu0 %v3131_v7  ;;  %1422 = vmatprep.subr.mxu1 %v3134_v0 }
 0x446   :  { %1352 = vmatpush1.msra.mxu0 %v3137_v13  ;;  %1423 = vmatpush1.msra.mxu1 %v3140_v14  ;;  %v3563_v13 = vld [vmem:[#allocation49_spill] sm:$0xff] }
 0x447   :  { %1353 = vmatprep.subr.mxu0 %v3143_v15  ;;  %1424 = vmatprep.subr.mxu1 %v3146_v16  ;;  %v3161_v15 = vld [vmem:[#allocation6] sm:$0xff]  ;;  %v3165_v16 = vld [vmem:[#allocation6 + $0x10] sm:$0xff] }
 0x448   :  { %1354 = vmatpush1.msra.mxu0 %v3149_v17  ;;  %1425 = vmatpush1.msra.mxu1 %v3152_v20  ;;  %3560 = vst [vmem:[#allocation27_spill] sm:$0xff] %v3161_v15  ;;  %3561 = vst [vmem:[#allocation28_spill] sm:$0xff] %v3165_v16  ;;  %v3562_v20 = vld [vmem:[#allocation47_spill] sm:$0xff] }
 0x449   :  { %1355 = vmatprep.subr.mxu0 %v3155_v21  ;;  %1426 = vmatprep.subr.mxu1 %v3158_v22 }
 0x44a   :  { %1356 = vmatpush1.msra.mxu0 %v3161_v15  ;;  %1389 = vmatprep.mubr.f32.mxu0 %v3529_v31 }
 0x44b   :  { %1427 = vmatpush1.msra.mxu1 %v3165_v16  ;;  %1460 = vmatprep.mubr.f32.mxu1 %v3529_v31  ;;  %v3565_v31 = vld [vmem:[#allocation50_spill] sm:$0xff] }
 0x44c   :  { %1502 = vmatprep.subr.mxu0 %v2893_v33  ;;  %1573 = vmatprep.subr.mxu1 %v2896_v34 }
 0x4eb   :  { %v1214_v21 = vpop.f32.mrf.mxu0  ;;  %v1285_v7 = vpop.f32.mrf.mxu1 }
 0x4ec   :  { %v1290_v17 = vadd.f32 %v1214_v21, %v3562_v20  ;;  %v1292_v59 = vadd.f32 %v1285_v7, %v3564_v12 }
 0x4ed   :  { %v1216_v22 = vpop.f32.mrf.mxu0  ;;  %v1287_v16 = vpop.f32.mrf.mxu1 }
 0x4ee   :  { %v1993_v14 = vmul.f32 -1.442695, %v1290_v17  ;;  %v1291_v0 = vadd.f32 %v1216_v22, %v3563_v13  ;;  %v1995_v58 = vmul.f32 -1.442695, %v1292_v59  ;;  %v1293_v57 = vadd.f32 %v1287_v16, %v3565_v31  ;;  %v3570_v59 = vld [vmem:[#allocation38_spill] sm:$0xff]  ;;  %v3571_v16 = vld [vmem:[#allocation17_spill] sm:$0xff] }
 0x4ef   :  { %v3572_v22 = vld [vmem:[#allocation18_spill] sm:$0xff] }
 0x4f0   :  { %2085 = vpow2.f32 %v1993_v14  ;;  %v1994_v15 = vmul.f32 -1.442695, %v1291_v0 }
 0x4f2   :  { %2087 = vpow2.f32 %v1994_v15 }
 0x4f3   :  { %2089 = vpow2.f32 %v1995_v58 }
 0x4f4   :  { %2091 = vtanh.f32 %v1293_v57  ;;  %v3569_v57 = vld [vmem:[#allocation36_spill] sm:$0xff] }
 0x4fd   :  { %v2086_v33 = vpop.eup %2085 }
 0x4fe   :  { %v1303_v56 = vadd.f32 1.0, %v2086_v33 }
 0x4ff   :  { %v2088_v34 = vpop.eup %2087 }
 0x500   :  { %2093 = vrcp.f32 %v1303_v56  ;;  %v1304_v20 = vadd.f32 1.0, %v2088_v34  ;;  %v2090_v17 = vpop.eup %2089  ;;  %v3566_v34 = vld [vmem:[#allocation13_spill] sm:$0xff] }
 0x501   :  { %v2092_v13 = vpop.eup %2091  ;;  %v1305_v21 = vadd.f32 1.0, %v2090_v17  ;;  %v3568_v56 = vld [vmem:[#allocation37_spill] sm:$0xff]  ;;  %v3574_v17 = vld [vmem:[#allocation20_spill] sm:$0xff] }
 0x502   :  { %2095 = vrcp.f32 %v1304_v20  ;;  %v3573_v20 = vld [vmem:[#allocation19_spill] sm:$0xff] }
 0x503   :  { %2097 = vrcp.f32 %v1305_v21  ;;  %v3579_v21 = vld [vmem:[#allocation25_spill] sm:$0xff] }
 0x50d   :  { %v2094_v14 = vpop.eup %2093 }
 0x50e   :  { %v1314_v0 = vmul.f32 %v2094_v14, %v2092_v13  ;;  %v3575_v13 = vld [vmem:[#allocation21_spill] sm:$0xff]  ;;  %v3576_v14 = vld [vmem:[#allocation22_spill] sm:$0xff] }
 0x50f   :  { %v2096_v15 = vpop.eup %2095 }
 0x510   :  { %v1313_v12 = vmul.f32 %v2096_v15, %v3026_v18  ;;  %v2098_v31 = vpop.eup %2097  ;;  %v3567_v18 = vld [vmem:[#allocation35_spill] sm:$0xff]  ;;  %v3578_v15 = vld [vmem:[#allocation24_spill] sm:$0xff] }
 0x512   :  { %v3176_v7 = vadd.f32 %v1314_v0, %v1313_v12  ;;  %v3577_v0 = vld [vmem:[#allocation23_spill] sm:$0xff]  ;;  %v3580_v12 = vld [vmem:[#allocation26_spill] sm:$0xff] }
 0x514   :  { %2099 = vtanh.f32 %v3176_v7 }
 0x521   :  { %v2100_v33 = vpop.eup %2099 }
 0x522   :  { %v1317_v58 = vmul.f32 %v2100_v33, %v2098_v31  ;;  %v3581_v31 = vld [vmem:[#allocation27_spill] sm:$0xff]  ;;  %v3582_v33 = vmov 0.0  }
 0x524   :  { %1390 = vmatmul.mubr.f32.vlgmr.msra.gmra.mxu0 %v1317_v58  ;;  %1461 = vmatmul.mubr.f32.vlgmr.msra.gmra.mxu1 %v1317_v58  ;;  %v3583_v58 = vld [vmem:[#allocation28_spill] sm:$0xff] }
 0x525   :  { %1503 = vmatpush1.msra.mxu0 %v2907_v5  ;;  %1574 = vmatpush1.msra.mxu1 %v2910_v4 }
 0x526   :  { %1504 = vmatprep.subr.mxu0 %v2913_v28  ;;  %1575 = vmatprep.subr.mxu1 %v2916_v2 }
 0x527   :  { %1505 = vmatpush1.msra.mxu0 %v2919_v3  ;;  %1576 = vmatpush1.msra.mxu1 %v2922_v37 }
 0x528   :  { %1506 = vmatprep.subr.mxu0 %v2925_v61  ;;  %1577 = vmatprep.subr.mxu1 %v2928_v10 }
 0x529   :  { %1507 = vmatpush1.msra.mxu0 %v2931_v6  ;;  %1578 = vmatpush1.msra.mxu1 %v2934_v60 }
 0x52a   :  { %1508 = vmatprep.subr.mxu0 %v2937_v55  ;;  %1579 = vmatprep.subr.mxu1 %v2940_v46 }
 0x52b   :  { %1509 = vmatpush1.msra.mxu0 %v2943_v19  ;;  %1580 = vmatpush1.msra.mxu1 %v2946_v8 }
 0x52c   :  { %1510 = vmatprep.subr.mxu0 %v2949_v11  ;;  %1581 = vmatprep.subr.mxu1 %v2952_v35 }
 0x52d   :  { %1511 = vmatpush1.msra.mxu0 %v3543_v23  ;;  %1582 = vmatpush1.msra.mxu1 %v3544_v24 }
 0x52e   :  { %1512 = vmatprep.subr.mxu0 %v2961_v39  ;;  %1583 = vmatprep.subr.mxu1 %v2964_v1 }
 0x52f   :  { %1513 = vmatpush1.msra.mxu0 %v2967_v9  ;;  %1584 = vmatpush1.msra.mxu1 %v2970_v62 }
 0x530   :  { %1514 = vmatprep.subr.mxu0 %v2973_v36  ;;  %1585 = vmatprep.subr.mxu1 %v2976_v38 }
 0x531   :  { %1515 = vmatpush1.msra.mxu0 %v3053_v25  ;;  %1586 = vmatpush1.msra.mxu1 %v3056_v26 }
 0x532   :  { %1516 = vmatprep.subr.mxu0 %v3059_v27  ;;  %1587 = vmatprep.subr.mxu1 %v3062_v29 }
 0x533   :  { %1517 = vmatpush1.msra.mxu0 %v3065_v30  ;;  %1588 = vmatpush1.msra.mxu1 %v3068_v32 }
 0x534   :  { %1518 = vmatprep.subr.mxu0 %v3071_v63  ;;  %1589 = vmatprep.subr.mxu1 %v3074_v40 }
 0x535   :  { %1519 = vmatpush1.msra.mxu0 %v3077_v41  ;;  %1590 = vmatpush1.msra.mxu1 %v3080_v42 }
 0x536   :  { %1520 = vmatprep.subr.mxu0 %v3083_v43  ;;  %1591 = vmatprep.subr.mxu1 %v3086_v44 }
 0x537   :  { %1521 = vmatpush1.msra.mxu0 %v3089_v45  ;;  %1592 = vmatpush1.msra.mxu1 %v3092_v47 }
 0x538   :  { %1522 = vmatprep.subr.mxu0 %v3095_v48  ;;  %1593 = vmatprep.subr.mxu1 %v3098_v49 }
 0x539   :  { %1523 = vmatpush1.msra.mxu0 %v3101_v50  ;;  %1594 = vmatpush1.msra.mxu1 %v3104_v51 }
 0x53a   :  { %1524 = vmatprep.subr.mxu0 %v3107_v52  ;;  %1595 = vmatprep.subr.mxu1 %v3110_v53 }
 0x53b   :  { %1525 = vmatpush1.msra.mxu0 %v3113_v54  ;;  %1596 = vmatpush1.msra.mxu1 %v3566_v34 }
 0x53c   :  { %1526 = vmatprep.subr.mxu0 %v3567_v18  ;;  %1597 = vmatprep.subr.mxu1 %v3568_v56 }
 0x53d   :  { %1527 = vmatpush1.msra.mxu0 %v3569_v57  ;;  %1598 = vmatpush1.msra.mxu1 %v3570_v59  ;;  %v3588_v59 = vld [vmem:[#allocation52_spill] sm:$0xff] }
 0x53e   :  { %1528 = vmatprep.subr.mxu0 %v3571_v16  ;;  %1599 = vmatprep.subr.mxu1 %v3572_v22 }
 0x53f   :  { %1529 = vmatpush1.msra.mxu0 %v3573_v20  ;;  %1600 = vmatpush1.msra.mxu1 %v3574_v17  ;;  %v3584_v17 = vld [vmem:[#allocation14_spill] sm:$0xff] }
 0x540   :  { %1530 = vmatprep.subr.mxu0 %v3575_v13  ;;  %1601 = vmatprep.subr.mxu1 %v3576_v14  ;;  %v3585_v13 = vld [vmem:[#allocation15_spill] sm:$0xff] }
 0x541   :  { %1531 = vmatpush1.msra.mxu0 %v3577_v0  ;;  %1602 = vmatpush1.msra.mxu1 %v3578_v15  ;;  %v3586_v0 = vld [vmem:[#allocation51_spill] sm:$0xff] }
 0x542   :  { %1532 = vmatprep.subr.mxu0 %v3579_v21  ;;  %1603 = vmatprep.subr.mxu1 %v3580_v12  ;;  %v3587_v21 = vld [vmem:[#allocation53_spill] sm:$0xff] }
 0x543   :  { %1533 = vmatpush1.msra.mxu0 %v3581_v31  ;;  %1566 = vmatprep.mubr.f32.mxu0 %v3582_v33 }
 0x544   :  { %1604 = vmatpush1.msra.mxu1 %v3583_v58  ;;  %1637 = vmatprep.mubr.f32.mxu1 %v3582_v33  ;;  %v3589_v33 = vld [vmem:[#allocation54_spill] sm:$0xff] }
 0x545   :  { %1679 = vmatprep.subr.mxu0 %v3584_v17  ;;  %1750 = vmatprep.subr.mxu1 %v3585_v13 }
 0x5e4   :  { %v1391_v14 = vpop.f32.mrf.mxu0  ;;  %v1462_v31 = vpop.f32.mrf.mxu1 }
 0x5e5   :  { %v1467_v20 = vadd.f32 %v1391_v14, %v3586_v0  ;;  %v1469_v57 = vadd.f32 %v1462_v31, %v3588_v59 }
 0x5e6   :  { %v1393_v15 = vpop.f32.mrf.mxu0  ;;  %v1464_v58 = vpop.f32.mrf.mxu1 }
 0x5e7   :  { %v1996_v22 = vmul.f32 -1.442695, %v1467_v20  ;;  %v1468_v16 = vadd.f32 %v1393_v15, %v3587_v21  ;;  %v1998_v56 = vmul.f32 -1.442695, %v1469_v57  ;;  %v1470_v18 = vadd.f32 %v1464_v58, %v3589_v33  ;;  %v1855_v33 = vld [vmem:[#allocation5] sm:$0x1] }
 0x5e8   :  { %v2266_v58 = vmov 0  }
 0x5e9   :  { %2101 = vpow2.f32 %v1996_v22  ;;  %v1997_v12 = vmul.f32 -1.442695, %v1468_v16  ;;  %2020 = vset.pattern.permute.xlu0 %v2266_v58 }
 0x5ea   :  { %1858 = vperm.xlu0 %2020, %v1855_v33  }
 0x5eb   :  { %2103 = vpow2.f32 %v1997_v12 }
 0x5ec   :  { %2105 = vpow2.f32 %v1998_v56 }
 0x5ed   :  { %2107 = vtanh.f32 %v1470_v18 }
 0x5f6   :  { %v2102_v17 = vpop.eup %2101 }
 0x5f7   :  { %v1480_v34 = vadd.f32 1.0, %v2102_v17 }
 0x5f8   :  { %v2104_v13 = vpop.eup %2103 }
 0x5f9   :  { %2109 = vrcp.f32 %v1480_v34  ;;  %v1481_v14 = vadd.f32 1.0, %v2104_v13  ;;  %v2106_v20 = vpop.eup %2105  ;;  %v3612_v13 = vld [vmem:[#allocation59_spill] sm:$0xff] }
 0x5fa   :  { %v2108_v0 = vpop.eup %2107  ;;  %v1482_v21 = vadd.f32 1.0, %v2106_v20 }
 0x5fb   :  { %2111 = vrcp.f32 %v1481_v14 }
 0x5fc   :  { %2113 = vrcp.f32 %v1482_v21 }
 0x606   :  { %v2110_v22 = vpop.eup %2109 }
 0x607   :  { %v1491_v16 = vmul.f32 %v2110_v22, %v2108_v0  ;;  %v3613_v22 = vld [vmem:[#allocation61_spill] sm:$0xff] }
 0x608   :  { %v2112_v15 = vpop.eup %2111 }
 0x609   :  { %v1490_v59 = vmul.f32 %v2112_v15, %v3176_v7  ;;  %v2114_v57 = vpop.eup %2113 }
 0x60b   :  { %v3250_v12 = vadd.f32 %v1491_v16, %v1490_v59  ;;  %v3614_v59 = vld [vmem:[#allocation60_spill] sm:$0xff] }
 0x60d   :  { %2115 = vtanh.f32 %v3250_v12 }
 0x61a   :  { %v2116_v56 = vpop.eup %2115 }
 0x61b   :  { %v1494_v31 = vmul.f32 %v2116_v56, %v2114_v57 }
 0x61d   :  { %1567 = vmatmul.mubr.f32.vlgmr.msra.gmra.mxu0 %v1494_v31  ;;  %1638 = vmatmul.mubr.f32.vlgmr.msra.gmra.mxu1 %v1494_v31  ;;  %v3615_v31 = vld [vmem:[#allocation62_spill] sm:$0xff] }
 0x61e   :  { %1680 = vmatpush1.msra.mxu0 %v2907_v5  ;;  %1751 = vmatpush1.msra.mxu1 %v2910_v4  ;;  %v3590_v5 = vld [vmem:[#allocation13_spill] sm:$0xff]  ;;  %v3591_v4 = vld [vmem:[#allocation35_spill] sm:$0xff] }
 0x61f   :  { %1681 = vmatprep.subr.mxu0 %v2913_v28  ;;  %1752 = vmatprep.subr.mxu1 %v2916_v2  ;;  %v3592_v28 = vld [vmem:[#allocation37_spill] sm:$0xff]  ;;  %v3593_v2 = vld [vmem:[#allocation36_spill] sm:$0xff] }
 0x620   :  { %1682 = vmatpush1.msra.mxu0 %v2919_v3  ;;  %1753 = vmatpush1.msra.mxu1 %v2922_v37  ;;  %v3594_v3 = vld [vmem:[#allocation38_spill] sm:$0xff]  ;;  %v3595_v37 = vld [vmem:[#allocation17_spill] sm:$0xff] }
 0x621   :  { %1683 = vmatprep.subr.mxu0 %v2925_v61  ;;  %1754 = vmatprep.subr.mxu1 %v2928_v10  ;;  %v3596_v61 = vld [vmem:[#allocation18_spill] sm:$0xff]  ;;  %v3597_v10 = vld [vmem:[#allocation19_spill] sm:$0xff] }
 0x622   :  { %1684 = vmatpush1.msra.mxu0 %v2931_v6  ;;  %1755 = vmatpush1.msra.mxu1 %v2934_v60  ;;  %v3598_v6 = vld [vmem:[#allocation20_spill] sm:$0xff]  ;;  %v3599_v60 = vld [vmem:[#allocation21_spill] sm:$0xff] }
 0x623   :  { %1685 = vmatprep.subr.mxu0 %v2937_v55  ;;  %1756 = vmatprep.subr.mxu1 %v2940_v46  ;;  %v3600_v55 = vld [vmem:[#allocation22_spill] sm:$0xff]  ;;  %v3601_v46 = vld [vmem:[#allocation23_spill] sm:$0xff] }
 0x624   :  { %1686 = vmatpush1.msra.mxu0 %v2943_v19  ;;  %1757 = vmatpush1.msra.mxu1 %v2946_v8  ;;  %v3602_v19 = vld [vmem:[#allocation24_spill] sm:$0xff]  ;;  %v3603_v8 = vld [vmem:[#allocation25_spill] sm:$0xff] }
 0x625   :  { %1687 = vmatprep.subr.mxu0 %v2949_v11  ;;  %1758 = vmatprep.subr.mxu1 %v2952_v35  ;;  %v3604_v11 = vld [vmem:[#allocation26_spill] sm:$0xff]  ;;  %v3605_v35 = vld [vmem:[#allocation27_spill] sm:$0xff] }
 0x626   :  { %1688 = vmatpush1.msra.mxu0 %v3543_v23  ;;  %1759 = vmatpush1.msra.mxu1 %v3544_v24  ;;  %v3609_v24 = vld [vmem:[#allocation57_spill] sm:$0xff] }
 0x627   :  { %1689 = vmatprep.subr.mxu0 %v2961_v39  ;;  %1760 = vmatprep.subr.mxu1 %v2964_v1  ;;  %v3608_v1 = vld [vmem:[#allocation55_spill] sm:$0xff] }
 0x628   :  { %1690 = vmatpush1.msra.mxu0 %v2967_v9  ;;  %1761 = vmatpush1.msra.mxu1 %v2970_v62 }
 0x629   :  { %1691 = vmatprep.subr.mxu0 %v2973_v36  ;;  %1762 = vmatprep.subr.mxu1 %v2976_v38  ;;  %v3606_v36 = vmov 0.0   ;;  %v3607_v38 = vld [vmem:[#allocation28_spill] sm:$0xff] }
 0x62a   :  { %1692 = vmatpush1.msra.mxu0 %v3053_v25  ;;  %1763 = vmatpush1.msra.mxu1 %v3056_v26 }
 0x62b   :  { %1693 = vmatprep.subr.mxu0 %v3059_v27  ;;  %1764 = vmatprep.subr.mxu1 %v3062_v29  ;;  %v3610_v29 = vld [vmem:[#allocation56_spill] sm:$0xff] }
 0x62c   :  { %1694 = vmatpush1.msra.mxu0 %v3065_v30  ;;  %1765 = vmatpush1.msra.mxu1 %v3068_v32 }
 0x62d   :  { %1695 = vmatprep.subr.mxu0 %v3071_v63  ;;  %1766 = vmatprep.subr.mxu1 %v3074_v40  ;;  %v3611_v40 = vld [vmem:[#allocation58_spill] sm:$0xff] }
 0x62e   :  { %1696 = vmatpush1.msra.mxu0 %v3077_v41  ;;  %1767 = vmatpush1.msra.mxu1 %v3080_v42 }
 0x62f   :  { %1697 = vmatprep.subr.mxu0 %v3083_v43  ;;  %1768 = vmatprep.subr.mxu1 %v3086_v44 }
 0x630   :  { %1698 = vmatpush1.msra.mxu0 %v3089_v45  ;;  %1769 = vmatpush1.msra.mxu1 %v3092_v47 }
 0x631   :  { %1699 = vmatprep.subr.mxu0 %v3095_v48  ;;  %1770 = vmatprep.subr.mxu1 %v3098_v49 }
 0x632   :  { %1700 = vmatpush1.msra.mxu0 %v3101_v50  ;;  %1771 = vmatpush1.msra.mxu1 %v3104_v51 }
 0x633   :  { %1701 = vmatprep.subr.mxu0 %v3107_v52  ;;  %1772 = vmatprep.subr.mxu1 %v3110_v53 }
 0x634   :  { %1702 = vmatpush1.msra.mxu0 %v3113_v54  ;;  %1773 = vmatpush1.msra.mxu1 %v3590_v5 }
 0x635   :  { %1703 = vmatprep.subr.mxu0 %v3591_v4  ;;  %1774 = vmatprep.subr.mxu1 %v3592_v28 }
 0x636   :  { %1704 = vmatpush1.msra.mxu0 %v3593_v2  ;;  %1775 = vmatpush1.msra.mxu1 %v3594_v3 }
 0x637   :  { %1705 = vmatprep.subr.mxu0 %v3595_v37  ;;  %1776 = vmatprep.subr.mxu1 %v3596_v61 }
 0x638   :  { %1706 = vmatpush1.msra.mxu0 %v3597_v10  ;;  %1777 = vmatpush1.msra.mxu1 %v3598_v6 }
 0x639   :  { %1707 = vmatprep.subr.mxu0 %v3599_v60  ;;  %1778 = vmatprep.subr.mxu1 %v3600_v55 }
 0x63a   :  { %1708 = vmatpush1.msra.mxu0 %v3601_v46  ;;  %1779 = vmatpush1.msra.mxu1 %v3602_v19 }
 0x63b   :  { %1709 = vmatprep.subr.mxu0 %v3603_v8  ;;  %1780 = vmatprep.subr.mxu1 %v3604_v11 }
 0x63c   :  { %1710 = vmatpush1.msra.mxu0 %v3605_v35  ;;  %1743 = vmatprep.mubr.f32.mxu0 %v3606_v36 }
 0x63d   :  { %1781 = vmatpush1.msra.mxu1 %v3607_v38  ;;  %1814 = vmatprep.mubr.f32.mxu1 %v3606_v36 }
 0x63e   :  { %2008 = vmatprep.subr.mxu0 %v3606_v36 }
 0x665   :  { %v1859_v38 = vpop.permute.xlu0 %1858 }
 0x6dd   :  { %v1568_v39 = vpop.f32.mrf.mxu0  ;;  %v1639_v27 = vpop.f32.mrf.mxu1 }
 0x6de   :  { %v1644_v9 = vadd.f32 %v1568_v39, %v3608_v1  ;;  %v1646_v30 = vadd.f32 %v1639_v27, %v3610_v29  ;;  %v3616_v39 = vld [vmem:[#allocation34_spill] sm:$0xff] }
 0x6df   :  { %v1570_v62 = vpop.f32.mrf.mxu0  ;;  %v1641_v32 = vpop.f32.mrf.mxu1  ;;  %v3617_v1 = vsub.s32 0, %v3616_v39 }
 0x6e0   :  { %v1999_v23 = vmul.f32 -1.442695, %v1644_v9  ;;  %v1645_v25 = vadd.f32 %v1570_v62, %v3609_v24  ;;  %v2001_v63 = vmul.f32 -1.442695, %v1646_v30  ;;  %v1647_v41 = vadd.f32 %v1641_v32, %v3611_v40 }
 0x6e1   :  { %v1864_v9 = vrot.slane %v1859_v38, %v3617_v1 }
 0x6e2   :  { %2117 = vpow2.f32 %v1999_v23  ;;  %v2000_v26 = vmul.f32 -1.442695, %v1645_v25 }
 0x6e4   :  { %2119 = vpow2.f32 %v2000_v26 }
 0x6e5   :  { %2121 = vpow2.f32 %v2001_v63 }
 0x6e6   :  { %2123 = vtanh.f32 %v1647_v41 }
 0x6ef   :  { %v2118_v42 = vpop.eup %2117 }
 0x6f0   :  { %v1657_v43 = vadd.f32 1.0, %v2118_v42 }
 0x6f1   :  { %v2120_v44 = vpop.eup %2119 }
 0x6f2   :  { %2125 = vrcp.f32 %v1657_v43  ;;  %v1658_v45 = vadd.f32 1.0, %v2120_v44  ;;  %v2122_v47 = vpop.eup %2121 }
 0x6f3   :  { %v2124_v48 = vpop.eup %2123  ;;  %v1659_v52 = vadd.f32 1.0, %v2122_v47 }
 0x6f4   :  { %2127 = vrcp.f32 %v1658_v45 }
 0x6f5   :  { %2129 = vrcp.f32 %v1659_v52 }
 0x6ff   :  { %v2126_v49 = vpop.eup %2125 }
 0x700   :  { %v1668_v50 = vmul.f32 %v2126_v49, %v2124_v48 }
 0x701   :  { %v2128_v51 = vpop.eup %2127 }
 0x702   :  { %v1667_v53 = vmul.f32 %v2128_v51, %v3250_v12  ;;  %v2130_v7 = vpop.eup %2129 }
 0x704   :  { %v1669_v54 = vadd.f32 %v1668_v50, %v1667_v53 }
 0x706   :  { %2131 = vtanh.f32 %v1669_v54 }
 0x713   :  { %v2132_v34 = vpop.eup %2131 }
 0x714   :  { %v1671_v18 = vmul.f32 %v2132_v34, %v2130_v7 }
 0x716   :  { %1744 = vmatmul.mubr.f32.vlgmr.msra.gmra.mxu0 %v1671_v18  ;;  %1815 = vmatmul.mubr.f32.vlgmr.msra.gmra.mxu1 %v1671_v18 }
 0x717   :  { %2010 = vmatprep.mubr.msk.f32.mxu0 %vm2265_vm1, %v3606_v36  ;;  %v1854_v36 = vld [vmem:[%s3340_s4] sm:$0x1]  ;;  %s2237_s4 = scalar_lea.vmem %s1950_s12, 16 }
 0x718   :  { %p2238_p5 = scmp.ne.s32.totalorder %s1950_s12, %s2237_s4  ;;  %p2243_p7 = scmp.lt.s32.totalorder %s2241_s13, %s2237_s4 }
 0x71a   :  { %p2244_p8 = por %p2243_p7, %p2242_p6 }
 0x71c   :  { %p2245_p9 = pnand %p2244_p8, %p2238_p5 }
 0x7d6   :  { %v1745_v17 = vpop.f32.mrf.mxu0  ;;  %v1816_v21 = vpop.f32.mrf.mxu1 }
 0x7d7   :  { %v1821_v14 = vadd.f32 %v1745_v17, %v3612_v13  ;;  %v1823_v12 = vadd.f32 %v1816_v21, %v3614_v59 }
 0x7d8   :  { %v1747_v20 = vpop.f32.mrf.mxu0  ;;  %v1818_v57 = vpop.f32.mrf.mxu1 }
 0x7d9   :  { %v2002_v0 = vmul.f32 -1.442695, %v1821_v14  ;;  %v1822_v16 = vadd.f32 %v1747_v20, %v3613_v22  ;;  %v2004_v56 = vmul.f32 -1.442695, %v1823_v12  ;;  %v1824_v5 = vadd.f32 %v1818_v57, %v3615_v31 }
 0x7db   :  { %2133 = vpow2.f32 %v2002_v0  ;;  %v2003_v15 = vmul.f32 -1.442695, %v1822_v16 }
 0x7dd   :  { %2135 = vpow2.f32 %v2003_v15 }
 0x7de   :  { %2137 = vpow2.f32 %v2004_v56 }
 0x7df   :  { %2139 = vtanh.f32 %v1824_v5 }
 0x7e8   :  { %v2134_v4 = vpop.eup %2133 }
 0x7e9   :  { %v1834_v28 = vadd.f32 1.0, %v2134_v4 }
 0x7ea   :  { %v2136_v2 = vpop.eup %2135 }
 0x7eb   :  { %2141 = vrcp.f32 %v1834_v28  ;;  %v1835_v3 = vadd.f32 1.0, %v2136_v2  ;;  %v2138_v37 = vpop.eup %2137 }
 0x7ec   :  { %v2140_v61 = vpop.eup %2139  ;;  %v1836_v55 = vadd.f32 1.0, %v2138_v37 }
 0x7ed   :  { %2143 = vrcp.f32 %v1835_v3 }
 0x7ee   :  { %2145 = vrcp.f32 %v1836_v55 }
 0x7f8   :  { %v2142_v10 = vpop.eup %2141 }
 0x7f9   :  { %v1845_v6 = vmul.f32 %v2142_v10, %v2140_v61 }
 0x7fa   :  { %v2144_v60 = vpop.eup %2143 }
 0x7fb   :  { %v1844_v46 = vmul.f32 %v2144_v60, %v1669_v54  ;;  %v2146_v8 = vpop.eup %2145 }
 0x7fd   :  { %v1846_v19 = vadd.f32 %v1845_v6, %v1844_v46 }
 0x7ff   :  { %2147 = vtanh.f32 %v1846_v19 }
 0x80c   :  { %v2148_v11 = vpop.eup %2147 }
 0x80d   :  { %v1848_v35 = vmul.f32 %v2148_v11, %v2146_v8 }
 0x80f   :  { %2009 = vmatpush3.xpose.msra.mxu0 %v1848_v35 }
 0x812   :  { %2011 = vmatmul.mubr.f32.vlgmr.msra.gmra.mxu0 %v1854_v36 }
 0x8d2   :  { %v1931_v62 = vpop.f32.mrf.mxu0 }
 0x8d3   :  { %v1932_v23 = vadd.f32 %v1931_v62, %v1864_v9 }
 0x8d4   :  { %v2012_v24 = vpop.f32.mrf.mxu0 }
 0x8d5   :  { %v2005_v25 = vmul.f32 -1.442695, %v1932_v23 }
 0x8d7   :  { %2149 = vpow2.f32 %v2005_v25 }
 0x8e4   :  { %v2150_v26 = vpop.eup %2149 }
 0x8e5   :  { %v1938_v27 = vadd.f32 1.0, %v2150_v26 }
 0x8e7   :  { %2151 = vrcp.f32 %v1938_v27 }
 0x8f4   :  { %v2152_v29 = vpop.eup %2151 }
 0x8f5   :  { %1942 = vst.msk [vmem:[#allocation9] sm:$0x1] %vm1941_vm2, %v2152_v29 }
 0x8f6   :  { %2248 = shalt.err (!%p2245_p9)
}
 0x8f7   :  { %1952 = dma.vmem_to_hbm [thread:$0]  %s1950_s12, 16, %s3342_s6, [#allocation8]  }
 0x8f8   :  { %2259 = dma.done.wait [#allocation8], 16  }
 0x8f9   :  { %2260 = vsyncadd [#allocation8], 4294967280 }
 0x8fa   :  { %1956 = vsyncpa [#allocation7], 1 }
 0x8fb   :  { %1957 = vsyncpa [#allocation8], 1 }

</bundles_post_ra>
